<compile_context>
chip_gen: v5e
topology: v5e:2x2
jax: 0.10.0
libtpu: 0.0.40
codegen_flags: <defaults>
</compile_context>

<pallas_src>
import functools

import jax
import jax.numpy as jnp
from jax.experimental import pallas as pl
from jax.experimental.pallas import tpu as pltpu

# ----------------------------- "config" ------------------------------------
PAD = 0
MAX_LENGTH = 6                      # total_length = MAX_LENGTH + 2 = 8
CLIP_FORWARD = 0.5                  # config.clipForward
UNIFORM_INIT_RANGE = 0.1            # config.uniform_init_range

VOCAB_SIZE = 16
HIDDEN_SIZE = 32
NUM_LAYERS = 2
BATCH = 4
TOTAL_LENGTH = MAX_LENGTH + 2       # padded sequence length


# --------------------------- Pallas fused kernel ----------------------------
def _encoder_lstm_kernel(gx0_ref, wih_ref, whh_ref, b_ref, mask_ref,
                         out_ref, hn_ref, cn_ref,
                         hseq_ref, gx_ref,
                         *, seq_len, batch, hidden, num_layers, clip):
    """Fused multi-layer LSTM over a padded sequence.

    gx0_ref  : (T*N, 4H)   precomputed layer-0 gates_x (emb_proj gather),
                           time-major rows (row = t*N + n), gates (i,f,o,g)
    wih_ref  : (L-1, H, 4H) W_ih^T for layers >= 1, gate order (i,f,o,g)
    whh_ref  : (L, H, 4H)  W_hh^T per layer, gate order (i,f,o,g)
    b_ref    : (L-1, 1, 4H) b_ih + b_hh for layers >= 1
    mask_ref : (T*N, H)    {0,1} f32 validity mask (t < length[n])
    out_ref  : (N, T, H)   batch-major, zero-padded last-layer output
    hn_ref   : (L, N, H)   clamped final hidden state per layer
    cn_ref   : (L, N, H)   clamped final cell state per layer
    hseq_ref : (T*N, H)    VMEM scratch: inter-layer activation buffer
    gx_ref   : (T*N, 4H)   VMEM scratch: hoisted input projection (layers>=1)
    """
    T, N, H = seq_len, batch, hidden

    for layer in range(num_layers):
        is_last = layer == num_layers - 1

        if layer == 0:
            gx = gx0_ref                      # embedding @ W_ih0 + b0, pre-gathered
        else:
            # Hoisted, lane-dense input projection for the whole sequence:
            # one (T*N, H) @ (H, 4H) MXU matmul per layer (not per step).
            gx_ref[...] = (jnp.dot(hseq_ref[...], wih_ref[layer - 1],
                                   preferred_element_type=jnp.float32)
                           + b_ref[layer - 1])
            gx = gx_ref

        whh = whh_ref[layer]                  # (H, 4H), gate order (i, f, o, g)
        h = jnp.zeros((N, H), jnp.float32)
        c = jnp.zeros((N, H), jnp.float32)

        # TODO(synk): keep W_hh MXU-resident across the unrolled steps via
        # pltpu.matmul_push_rhs/acc_lhs/pop (and MRB accumulation on v7x);
        # not adopted here to avoid explicit-MXU lowering constraints at H=32.
        for t in range(T):
            row = t * N                                   # static, 8-aligned
            gates = gx[pl.ds(row, N), :] + jnp.dot(
                h, whh, preferred_element_type=jnp.float32)

            # gate order (i, f, o, g): one sigmoid over 3H lanes, one tanh.
            sig = jax.nn.sigmoid(gates[:, :3 * H])
            i_g = sig[:, 0 * H:1 * H]
            f_g = sig[:, 1 * H:2 * H]
            o_g = sig[:, 2 * H:3 * H]
            g_g = jnp.tanh(gates[:, 3 * H:])

            c_new = f_g * c + i_g * g_g
            h_new = o_g * jnp.tanh(c_new)

            # Precomputed {0,1} mask; exact select via arithmetic (m is 0/1).
            m = mask_ref[pl.ds(row, N), :]                # (N, H)
            nm = 1.0 - m
            mh = m * h_new                                # masked output
            h = mh + nm * h
            c = m * c_new + nm * c

            if is_last:
                out_ref[:, t, :] = mh                     # batch-major store
            else:
                hseq_ref[pl.ds(row, N), :] = mh           # next layer's input

        # torch.clamp(h_n / c_n, -clipForward, clipForward)
        hn_ref[layer] = jnp.clip(h, -clip, clip)
        cn_ref[layer] = jnp.clip(c, -clip, clip)


# ----------------------------- parameter prep -------------------------------
def init_encoder_params(key, vocab_size, hidden_size, num_layers, rng_range):
    keys = jax.random.split(key, 1 + 4 * num_layers)
    emb = jax.random.uniform(keys[0], (vocab_size, hidden_size),
                             minval=-rng_range, maxval=rng_range,
                             dtype=jnp.float32)
    emb = emb.at[PAD].set(0.0)                 # padding_idx=PAD -> zero row
    layers = []
    for l in range(num_layers):
        k = keys[1 + 4 * l: 1 + 4 * (l + 1)]
        layers.append(dict(
            w_ih=jax.random.uniform(k[0], (4 * hidden_size, hidden_size),
                                    minval=-rng_range, maxval=rng_range),
            w_hh=jax.random.uniform(k[1], (4 * hidden_size, hidden_size),
                                    minval=-rng_range, maxval=rng_range),
            b_ih=jax.random.uniform(k[2], (4 * hidden_size,),
                                    minval=-rng_range, maxval=rng_range),
            b_hh=jax.random.uniform(k[3], (4 * hidden_size,),
                                    minval=-rng_range, maxval=rng_range),
        ))
    return emb, layers


def prepare_encoder_params(emb_table, layers, hidden):
    """One-time prep: fold embedding + layer-0 input projection into a single
    (V, 4H) table, transpose / bias-fuse the remaining weights, and permute
    the PyTorch gate order (i, f, g, o) -> (i, f, o, g)."""
    H = hidden

    def reorder(m):  # (..., 4H) column blocks i|f|g|o -> i|f|o|g
        return jnp.concatenate(
            [m[..., :2 * H], m[..., 3 * H:], m[..., 2 * H:3 * H]], axis=-1)

    p0 = layers[0]
    emb_proj = reorder(
        jnp.asarray(emb_table, jnp.float32)
        @ jnp.asarray(p0["w_ih"], jnp.float32).T
        + (p0["b_ih"] + p0["b_hh"]).astype(jnp.float32))          # (V, 4H)

    rest = layers[1:] if len(layers) > 1 else layers[:1]   # dummy (unused) if L == 1
    wih_rest = jnp.stack([reorder(jnp.asarray(p["w_ih"], jnp.float32).T)
                          for p in rest])                         # (L-1, H, 4H)
    b_rest = jnp.stack([reorder((p["b_ih"] + p["b_hh"])
                                .astype(jnp.float32).reshape(1, 4 * H))
                        for p in rest])                           # (L-1, 1, 4H)
    whh_all = jnp.stack([reorder(jnp.asarray(p["w_hh"], jnp.float32).T)
                         for p in layers])                        # (L, H, 4H)
    return emb_proj, wih_rest, whh_all, b_rest


def _round_up(x, m):
    return ((x + m - 1) // m) * m


# ----------------------------- Encoder forward ------------------------------
@jax.jit
def encoder_forward(emb_proj, wih_rest, whh_all, b_rest, encoder_input, lengths):
    """encoder_input: (N, T) int32, lengths: (N,) int32.
    Returns (output (N, T, H), h_n (L, N, H), c_n (L, N, H))."""
    N, T = encoder_input.shape
    H = emb_proj.shape[1] // 4
    L = whh_all.shape[0]
    Np = _round_up(N, 8)                       # pad batch to sublane multiple

    # Fused embedding + layer-0 input projection: a single row gather of the
    # precomputed (V, 4H) table, in time-major order (row = t*Np + n).
    ids = jnp.pad(encoder_input.astype(jnp.int32), ((0, Np - N), (0, 0)),
                  constant_values=PAD)                            # (Np, T)
    ids_tm = jnp.transpose(ids).reshape(T * Np)
    gx0 = jnp.take(emb_proj, ids_tm, axis=0)                      # (T*Np, 4H)

    # Validity mask precomputed once (replaces per-step compare/broadcast and
    # the separate lengths VMEM input).  Padded batch rows have length 0.
    len_pad = jnp.pad(lengths.astype(jnp.int32), (0, Np - N))
    mask = (jnp.arange(T, dtype=jnp.int32)[:, None] < len_pad[None, :])
    mask = jnp.broadcast_to(mask[:, :, None], (T, Np, H))
    mask = mask.reshape(T * Np, H).astype(jnp.float32)            # (T*Np, H)

    kernel = functools.partial(_encoder_lstm_kernel, seq_len=T, batch=Np,
                               hidden=H, num_layers=L, clip=CLIP_FORWARD)

    out, h_n, c_n = pl.pallas_call(
        kernel,
        grid=(1,),
        in_specs=[
            pl.BlockSpec((T * Np, 4 * H), lambda i: (0, 0)),       # gx0
            pl.BlockSpec(wih_rest.shape, lambda i: (0, 0, 0)),     # W_ih^T (l>=1)
            pl.BlockSpec((L, H, 4 * H), lambda i: (0, 0, 0)),      # W_hh^T
            pl.BlockSpec(b_rest.shape, lambda i: (0, 0, 0)),       # bias (l>=1)
            pl.BlockSpec((T * Np, H), lambda i: (0, 0)),           # mask
        ],
        out_specs=[
            pl.BlockSpec((Np, T, H), lambda i: (0, 0, 0)),         # output (batch-major)
            pl.BlockSpec((L, Np, H), lambda i: (0, 0, 0)),         # h_n
            pl.BlockSpec((L, Np, H), lambda i: (0, 0, 0)),         # c_n
        ],
        out_shape=[
            jax.ShapeDtypeStruct((Np, T, H), jnp.float32),
            jax.ShapeDtypeStruct((L, Np, H), jnp.float32),
            jax.ShapeDtypeStruct((L, Np, H), jnp.float32),
        ],
        scratch_shapes=[
            pltpu.VMEM((T * Np, H), jnp.float32),        # inter-layer activations
            pltpu.VMEM((T * Np, 4 * H), jnp.float32),    # hoisted gates (layers>=1)
        ],
        compiler_params=pltpu.CompilerParams(
            dimension_semantics=("arbitrary",)),
    )(gx0, wih_rest, whh_all, b_rest, mask)

    # TODO(synk): inter-layer dropout (nn.LSTM dropout) only applies in
    # training mode; eval/inference semantics implemented here.
    if Np != N:
        out = out[:N]
        h_n = h_n[:, :N, :]
        c_n = c_n[:, :N, :]
    return out, h_n, c_n


# ---------------------------- pure-JAX reference ----------------------------
def _lstm_layer_ref(x_seq, w_ih, w_hh, b_ih, b_hh, lengths):
    T, N, H = x_seq.shape

    def step(carry, inp):
        h, c = carry
        x_t, t = inp
        gates = x_t @ w_ih.T + h @ w_hh.T + b_ih + b_hh
        i = jax.nn.sigmoid(gates[:, :H])
        f = jax.nn.sigmoid(gates[:, H:2 * H])
        g = jnp.tanh(gates[:, 2 * H:3 * H])
        o = jax.nn.sigmoid(gates[:, 3 * H:])
        c_new = f * c + i * g
        h_new = o * jnp.tanh(c_new)
        mask = (lengths > t)[:, None]
        h2 = jnp.where(mask, h_new, h)
        c2 = jnp.where(mask, c_new, c)
        out = jnp.where(mask, h_new, 0.0)
        return (h2, c2), out

    init = (jnp.zeros((N, H), jnp.float32), jnp.zeros((N, H), jnp.float32))
    (h, c), outs = jax.lax.scan(step, init, (x_seq, jnp.arange(T)))
    return outs, h, c


def encoder_forward_ref(emb_table, layers, encoder_input, lengths):
    emb = jnp.take(emb_table, encoder_input, axis=0)
    x = jnp.transpose(emb, (1, 0, 2))
    h_list, c_list = [], []
    for p in layers:
        x, h_n, c_n = _lstm_layer_ref(x, p["w_ih"], p["w_hh"],
                                      p["b_ih"], p["b_hh"], lengths)
        h_list.append(jnp.clip(h_n, -CLIP_FORWARD, CLIP_FORWARD))
        c_list.append(jnp.clip(c_n, -CLIP_FORWARD, CLIP_FORWARD))
    return (jnp.transpose(x, (1, 0, 2)),
            jnp.stack(h_list, 0), jnp.stack(c_list, 0))


# --------------------------------- main -------------------------------------
if __name__ == "__main__":
    key = jax.random.PRNGKey(0)
    k_param, k_tok = jax.random.split(key)

    emb_table, layers = init_encoder_params(
        k_param, VOCAB_SIZE, HIDDEN_SIZE, NUM_LAYERS, UNIFORM_INIT_RANGE)
    # One-time kernel-friendly parameter preparation (not per forward call).
    emb_proj, wih_rest, whh_all, b_rest = prepare_encoder_params(
        emb_table, layers, HIDDEN_SIZE)

    # (N, T) token ids, padded with PAD beyond each sequence's length.
    lengths = jnp.array([8, 6, 3, 5], dtype=jnp.int32)            # (N,)
    tokens = jax.random.randint(k_tok, (BATCH, TOTAL_LENGTH), 1, VOCAB_SIZE,
                                dtype=jnp.int32)
    pos = jnp.arange(TOTAL_LENGTH)[None, :]
    encoder_input = jnp.where(pos < lengths[:, None], tokens, PAD)

    output, h_n, c_n = encoder_forward(emb_proj, wih_rest, whh_all, b_rest,
                                       encoder_input, lengths)
    jax.block_until_ready((output, h_n, c_n))

    out_ref, h_ref, c_ref = encoder_forward_ref(emb_table, layers,
                                                encoder_input, lengths)
    assert output.shape == (BATCH, TOTAL_LENGTH, HIDDEN_SIZE)
    assert h_n.shape == (NUM_LAYERS, BATCH, HIDDEN_SIZE)
    assert c_n.shape == (NUM_LAYERS, BATCH, HIDDEN_SIZE)
    assert jnp.allclose(output, out_ref, atol=2e-5), "output mismatch"
    assert jnp.allclose(h_n, h_ref, atol=2e-5), "h_n mismatch"
    assert jnp.allclose(c_n, c_ref, atol=2e-5), "c_n mismatch"

    print("KERNEL_OK")
</pallas_src>

<mosaic_0001>
module attributes {stable_mosaic.version = 11 : i64} {
  func.func @_encoder_lstm_kernel(%arg0: i32, %arg1: memref<64x128xf32, #tpu.memory_space<vmem>>, %arg2: memref<1x32x128xf32, #tpu.memory_space<vmem>>, %arg3: memref<2x32x128xf32, #tpu.memory_space<vmem>>, %arg4: memref<1x1x128xf32, #tpu.memory_space<vmem>>, %arg5: memref<64x32xf32, #tpu.memory_space<vmem>>, %arg6: memref<8x8x32xf32, #tpu.memory_space<vmem>>, %arg7: memref<2x8x32xf32, #tpu.memory_space<vmem>>, %arg8: memref<2x8x32xf32, #tpu.memory_space<vmem>>, %arg9: memref<64x32xf32, #tpu.memory_space<vmem>>, %arg10: memref<64x128xf32, #tpu.memory_space<vmem>>) attributes {dimension_semantics = [#tpu.dimension_semantics<arbitrary>], iteration_bounds = array<i64: 1>, scalar_prefetch = 0 : i64, scratch_operands = 2 : i64, tpu.core_type = #tpu.core_type<tc>, window_params = [{pipeline_mode = #tpu.pipeline_mode<synchronous>, transform_indices = @transform_0, window_bounds = array<i64: 64, 128>}, {pipeline_mode = #tpu.pipeline_mode<synchronous>, transform_indices = @transform_1, window_bounds = array<i64: 1, 32, 128>}, {pipeline_mode = #tpu.pipeline_mode<synchronous>, transform_indices = @transform_2, window_bounds = array<i64: 2, 32, 128>}, {pipeline_mode = #tpu.pipeline_mode<synchronous>, transform_indices = @transform_3, window_bounds = array<i64: 1, 1, 128>}, {pipeline_mode = #tpu.pipeline_mode<synchronous>, transform_indices = @transform_4, window_bounds = array<i64: 64, 32>}, {pipeline_mode = #tpu.pipeline_mode<synchronous>, transform_indices = @transform_5, window_bounds = array<i64: 8, 8, 32>}, {pipeline_mode = #tpu.pipeline_mode<synchronous>, transform_indices = @transform_6, window_bounds = array<i64: 2, 8, 32>}, {pipeline_mode = #tpu.pipeline_mode<synchronous>, transform_indices = @transform_7, window_bounds = array<i64: 2, 8, 32>}]} {
    %c0 = arith.constant 0 : index
    %c0_0 = arith.constant 0 : index
    %c0_1 = arith.constant 0 : index
    %0 = vector.load %arg3[%c0, %c0_0, %c0_1] : memref<2x32x128xf32, #tpu.memory_space<vmem>>, vector<1x32x128xf32>
    %1 = vector.shape_cast %0 : vector<1x32x128xf32> to vector<32x128xf32>
    %cst = arith.constant 0.000000e+00 : f32
    %2 = vector.broadcast %cst : f32 to vector<8x32xf32>
    %cst_2 = arith.constant 0.000000e+00 : f32
    %3 = vector.broadcast %cst_2 : f32 to vector<8x32xf32>
    %c0_3 = arith.constant 0 : index
    %c0_4 = arith.constant 0 : index
    %4 = vector.load %arg1[%c0_3, %c0_4] : memref<64x128xf32, #tpu.memory_space<vmem>>, vector<8x128xf32>
    %cst_5 = arith.constant dense<0.000000e+00> : vector<8x128xf32>
    %5 = tpu.matmul %2, %1, %cst_5 {dimension_numbers = #tpu.dot_dimension_numbers<[1], [0], [0], [1], [0, 0, 1, 1], [], []>} : vector<8x32xf32>, vector<32x128xf32>, vector<8x128xf32> -> vector<8x128xf32>
    %6 = arith.addf %4, %5 : vector<8x128xf32>
    %7 = vector.extract_strided_slice %6 {offsets = [0, 0], sizes = [8, 96], strides = [1, 1]} : vector<8x128xf32> to vector<8x96xf32>
    %8 = arith.negf %7 : vector<8x96xf32>
    %9 = math.exp %8 : vector<8x96xf32>
    %cst_6 = arith.constant 1.000000e+00 : f32
    %10 = vector.broadcast %cst_6 : f32 to vector<8x96xf32>
    %11 = arith.addf %10, %9 : vector<8x96xf32>
    %12 = arith.divf %10, %11 : vector<8x96xf32>
    %13 = vector.extract_strided_slice %12 {offsets = [0, 0], sizes = [8, 32], strides = [1, 1]} : vector<8x96xf32> to vector<8x32xf32>
    %14 = vector.extract_strided_slice %12 {offsets = [0, 32], sizes = [8, 32], strides = [1, 1]} : vector<8x96xf32> to vector<8x32xf32>
    %15 = vector.extract_strided_slice %12 {offsets = [0, 64], sizes = [8, 32], strides = [1, 1]} : vector<8x96xf32> to vector<8x32xf32>
    %16 = vector.extract_strided_slice %6 {offsets = [0, 96], sizes = [8, 32], strides = [1, 1]} : vector<8x128xf32> to vector<8x32xf32>
    %17 = math.tanh %16 : vector<8x32xf32>
    %18 = arith.mulf %14, %3 : vector<8x32xf32>
    %19 = arith.mulf %13, %17 : vector<8x32xf32>
    %20 = arith.addf %18, %19 : vector<8x32xf32>
    %21 = math.tanh %20 : vector<8x32xf32>
    %22 = arith.mulf %15, %21 : vector<8x32xf32>
    %c0_7 = arith.constant 0 : index
    %c0_8 = arith.constant 0 : index
    %23 = vector.load %arg5[%c0_7, %c0_8] : memref<64x32xf32, #tpu.memory_space<vmem>>, vector<8x32xf32>
    %cst_9 = arith.constant 1.000000e+00 : f32
    %24 = vector.broadcast %cst_9 : f32 to vector<8x32xf32>
    %25 = arith.subf %24, %23 : vector<8x32xf32>
    %26 = arith.mulf %23, %22 : vector<8x32xf32>
    %27 = arith.mulf %25, %2 : vector<8x32xf32>
    %28 = arith.addf %26, %27 : vector<8x32xf32>
    %29 = arith.mulf %23, %20 : vector<8x32xf32>
    %30 = arith.mulf %25, %3 : vector<8x32xf32>
    %31 = arith.addf %29, %30 : vector<8x32xf32>
    %c0_10 = arith.constant 0 : index
    %c0_11 = arith.constant 0 : index
    %32 = vector.load %arg9[%c0_10, %c0_11] : memref<64x32xf32, #tpu.memory_space<vmem>>, vector<8x32xf32>
    tpu.vector_store %arg9[%c0_10, %c0_11], %26 {strides = array<i32>} : memref<64x32xf32, #tpu.memory_space<vmem>>, vector<8x32xf32>,
    %c8 = arith.constant 8 : index
    %c0_12 = arith.constant 0 : index
    %33 = vector.load %arg1[%c8, %c0_12] : memref<64x128xf32, #tpu.memory_space<vmem>>, vector<8x128xf32>
    %cst_13 = arith.constant dense<0.000000e+00> : vector<8x128xf32>
    %34 = tpu.matmul %28, %1, %cst_13 {dimension_numbers = #tpu.dot_dimension_numbers<[1], [0], [0], [1], [0, 0, 1, 1], [], []>} : vector<8x32xf32>, vector<32x128xf32>, vector<8x128xf32> -> vector<8x128xf32>
    %35 = arith.addf %33, %34 : vector<8x128xf32>
    %36 = vector.extract_strided_slice %35 {offsets = [0, 0], sizes = [8, 96], strides = [1, 1]} : vector<8x128xf32> to vector<8x96xf32>
    %37 = arith.negf %36 : vector<8x96xf32>
    %38 = math.exp %37 : vector<8x96xf32>
    %cst_14 = arith.constant 1.000000e+00 : f32
    %39 = vector.broadcast %cst_14 : f32 to vector<8x96xf32>
    %40 = arith.addf %39, %38 : vector<8x96xf32>
    %41 = arith.divf %39, %40 : vector<8x96xf32>
    %42 = vector.extract_strided_slice %41 {offsets = [0, 0], sizes = [8, 32], strides = [1, 1]} : vector<8x96xf32> to vector<8x32xf32>
    %43 = vector.extract_strided_slice %41 {offsets = [0, 32], sizes = [8, 32], strides = [1, 1]} : vector<8x96xf32> to vector<8x32xf32>
    %44 = vector.extract_strided_slice %41 {offsets = [0, 64], sizes = [8, 32], strides = [1, 1]} : vector<8x96xf32> to vector<8x32xf32>
    %45 = vector.extract_strided_slice %35 {offsets = [0, 96], sizes = [8, 32], strides = [1, 1]} : vector<8x128xf32> to vector<8x32xf32>
    %46 = math.tanh %45 : vector<8x32xf32>
    %47 = arith.mulf %43, %31 : vector<8x32xf32>
    %48 = arith.mulf %42, %46 : vector<8x32xf32>
    %49 = arith.addf %47, %48 : vector<8x32xf32>
    %50 = math.tanh %49 : vector<8x32xf32>
    %51 = arith.mulf %44, %50 : vector<8x32xf32>
    %c8_15 = arith.constant 8 : index
    %c0_16 = arith.constant 0 : index
    %52 = vector.load %arg5[%c8_15, %c0_16] : memref<64x32xf32, #tpu.memory_space<vmem>>, vector<8x32xf32>
    %cst_17 = arith.constant 1.000000e+00 : f32
    %53 = vector.broadcast %cst_17 : f32 to vector<8x32xf32>
    %54 = arith.subf %53, %52 : vector<8x32xf32>
    %55 = arith.mulf %52, %51 : vector<8x32xf32>
    %56 = arith.mulf %54, %28 : vector<8x32xf32>
    %57 = arith.addf %55, %56 : vector<8x32xf32>
    %58 = arith.mulf %52, %49 : vector<8x32xf32>
    %59 = arith.mulf %54, %31 : vector<8x32xf32>
    %60 = arith.addf %58, %59 : vector<8x32xf32>
    %c8_18 = arith.constant 8 : index
    %c0_19 = arith.constant 0 : index
    %61 = vector.load %arg9[%c8_18, %c0_19] : memref<64x32xf32, #tpu.memory_space<vmem>>, vector<8x32xf32>
    tpu.vector_store %arg9[%c8_18, %c0_19], %55 {strides = array<i32>} : memref<64x32xf32, #tpu.memory_space<vmem>>, vector<8x32xf32>,
    %c16 = arith.constant 16 : index
    %c0_20 = arith.constant 0 : index
    %62 = vector.load %arg1[%c16, %c0_20] : memref<64x128xf32, #tpu.memory_space<vmem>>, vector<8x128xf32>
    %cst_21 = arith.constant dense<0.000000e+00> : vector<8x128xf32>
    %63 = tpu.matmul %57, %1, %cst_21 {dimension_numbers = #tpu.dot_dimension_numbers<[1], [0], [0], [1], [0, 0, 1, 1], [], []>} : vector<8x32xf32>, vector<32x128xf32>, vector<8x128xf32> -> vector<8x128xf32>
    %64 = arith.addf %62, %63 : vector<8x128xf32>
    %65 = vector.extract_strided_slice %64 {offsets = [0, 0], sizes = [8, 96], strides = [1, 1]} : vector<8x128xf32> to vector<8x96xf32>
    %66 = arith.negf %65 : vector<8x96xf32>
    %67 = math.exp %66 : vector<8x96xf32>
    %cst_22 = arith.constant 1.000000e+00 : f32
    %68 = vector.broadcast %cst_22 : f32 to vector<8x96xf32>
    %69 = arith.addf %68, %67 : vector<8x96xf32>
    %70 = arith.divf %68, %69 : vector<8x96xf32>
    %71 = vector.extract_strided_slice %70 {offsets = [0, 0], sizes = [8, 32], strides = [1, 1]} : vector<8x96xf32> to vector<8x32xf32>
    %72 = vector.extract_strided_slice %70 {offsets = [0, 32], sizes = [8, 32], strides = [1, 1]} : vector<8x96xf32> to vector<8x32xf32>
    %73 = vector.extract_strided_slice %70 {offsets = [0, 64], sizes = [8, 32], strides = [1, 1]} : vector<8x96xf32> to vector<8x32xf32>
    %74 = vector.extract_strided_slice %64 {offsets = [0, 96], sizes = [8, 32], strides = [1, 1]} : vector<8x128xf32> to vector<8x32xf32>
    %75 = math.tanh %74 : vector<8x32xf32>
    %76 = arith.mulf %72, %60 : vector<8x32xf32>
    %77 = arith.mulf %71, %75 : vector<8x32xf32>
    %78 = arith.addf %76, %77 : vector<8x32xf32>
    %79 = math.tanh %78 : vector<8x32xf32>
    %80 = arith.mulf %73, %79 : vector<8x32xf32>
    %c16_23 = arith.constant 16 : index
    %c0_24 = arith.constant 0 : index
    %81 = vector.load %arg5[%c16_23, %c0_24] : memref<64x32xf32, #tpu.memory_space<vmem>>, vector<8x32xf32>
    %cst_25 = arith.constant 1.000000e+00 : f32
    %82 = vector.broadcast %cst_25 : f32 to vector<8x32xf32>
    %83 = arith.subf %82, %81 : vector<8x32xf32>
    %84 = arith.mulf %81, %80 : vector<8x32xf32>
    %85 = arith.mulf %83, %57 : vector<8x32xf32>
    %86 = arith.addf %84, %85 : vector<8x32xf32>
    %87 = arith.mulf %81, %78 : vector<8x32xf32>
    %88 = arith.mulf %83, %60 : vector<8x32xf32>
    %89 = arith.addf %87, %88 : vector<8x32xf32>
    %c16_26 = arith.constant 16 : index
    %c0_27 = arith.constant 0 : index
    %90 = vector.load %arg9[%c16_26, %c0_27] : memref<64x32xf32, #tpu.memory_space<vmem>>, vector<8x32xf32>
    tpu.vector_store %arg9[%c16_26, %c0_27], %84 {strides = array<i32>} : memref<64x32xf32, #tpu.memory_space<vmem>>, vector<8x32xf32>,
    %c24 = arith.constant 24 : index
    %c0_28 = arith.constant 0 : index
    %91 = vector.load %arg1[%c24, %c0_28] : memref<64x128xf32, #tpu.memory_space<vmem>>, vector<8x128xf32>
    %cst_29 = arith.constant dense<0.000000e+00> : vector<8x128xf32>
    %92 = tpu.matmul %86, %1, %cst_29 {dimension_numbers = #tpu.dot_dimension_numbers<[1], [0], [0], [1], [0, 0, 1, 1], [], []>} : vector<8x32xf32>, vector<32x128xf32>, vector<8x128xf32> -> vector<8x128xf32>
    %93 = arith.addf %91, %92 : vector<8x128xf32>
    %94 = vector.extract_strided_slice %93 {offsets = [0, 0], sizes = [8, 96], strides = [1, 1]} : vector<8x128xf32> to vector<8x96xf32>
    %95 = arith.negf %94 : vector<8x96xf32>
    %96 = math.exp %95 : vector<8x96xf32>
    %cst_30 = arith.constant 1.000000e+00 : f32
    %97 = vector.broadcast %cst_30 : f32 to vector<8x96xf32>
    %98 = arith.addf %97, %96 : vector<8x96xf32>
    %99 = arith.divf %97, %98 : vector<8x96xf32>
    %100 = vector.extract_strided_slice %99 {offsets = [0, 0], sizes = [8, 32], strides = [1, 1]} : vector<8x96xf32> to vector<8x32xf32>
    %101 = vector.extract_strided_slice %99 {offsets = [0, 32], sizes = [8, 32], strides = [1, 1]} : vector<8x96xf32> to vector<8x32xf32>
    %102 = vector.extract_strided_slice %99 {offsets = [0, 64], sizes = [8, 32], strides = [1, 1]} : vector<8x96xf32> to vector<8x32xf32>
    %103 = vector.extract_strided_slice %93 {offsets = [0, 96], sizes = [8, 32], strides = [1, 1]} : vector<8x128xf32> to vector<8x32xf32>
    %104 = math.tanh %103 : vector<8x32xf32>
    %105 = arith.mulf %101, %89 : vector<8x32xf32>
    %106 = arith.mulf %100, %104 : vector<8x32xf32>
    %107 = arith.addf %105, %106 : vector<8x32xf32>
    %108 = math.tanh %107 : vector<8x32xf32>
    %109 = arith.mulf %102, %108 : vector<8x32xf32>
    %c24_31 = arith.constant 24 : index
    %c0_32 = arith.constant 0 : index
    %110 = vector.load %arg5[%c24_31, %c0_32] : memref<64x32xf32, #tpu.memory_space<vmem>>, vector<8x32xf32>
    %cst_33 = arith.constant 1.000000e+00 : f32
    %111 = vector.broadcast %cst_33 : f32 to vector<8x32xf32>
    %112 = arith.subf %111, %110 : vector<8x32xf32>
    %113 = arith.mulf %110, %109 : vector<8x32xf32>
    %114 = arith.mulf %112, %86 : vector<8x32xf32>
    %115 = arith.addf %113, %114 : vector<8x32xf32>
    %116 = arith.mulf %110, %107 : vector<8x32xf32>
    %117 = arith.mulf %112, %89 : vector<8x32xf32>
    %118 = arith.addf %116, %117 : vector<8x32xf32>
    %c24_34 = arith.constant 24 : index
    %c0_35 = arith.constant 0 : index
    %119 = vector.load %arg9[%c24_34, %c0_35] : memref<64x32xf32, #tpu.memory_space<vmem>>, vector<8x32xf32>
    tpu.vector_store %arg9[%c24_34, %c0_35], %113 {strides = array<i32>} : memref<64x32xf32, #tpu.memory_space<vmem>>, vector<8x32xf32>,
    %c32 = arith.constant 32 : index
    %c0_36 = arith.constant 0 : index
    %120 = vector.load %arg1[%c32, %c0_36] : memref<64x128xf32, #tpu.memory_space<vmem>>, vector<8x128xf32>
    %cst_37 = arith.constant dense<0.000000e+00> : vector<8x128xf32>
    %121 = tpu.matmul %115, %1, %cst_37 {dimension_numbers = #tpu.dot_dimension_numbers<[1], [0], [0], [1], [0, 0, 1, 1], [], []>} : vector<8x32xf32>, vector<32x128xf32>, vector<8x128xf32> -> vector<8x128xf32>
    %122 = arith.addf %120, %121 : vector<8x128xf32>
    %123 = vector.extract_strided_slice %122 {offsets = [0, 0], sizes = [8, 96], strides = [1, 1]} : vector<8x128xf32> to vector<8x96xf32>
    %124 = arith.negf %123 : vector<8x96xf32>
    %125 = math.exp %124 : vector<8x96xf32>
    %cst_38 = arith.constant 1.000000e+00 : f32
    %126 = vector.broadcast %cst_38 : f32 to vector<8x96xf32>
    %127 = arith.addf %126, %125 : vector<8x96xf32>
    %128 = arith.divf %126, %127 : vector<8x96xf32>
    %129 = vector.extract_strided_slice %128 {offsets = [0, 0], sizes = [8, 32], strides = [1, 1]} : vector<8x96xf32> to vector<8x32xf32>
    %130 = vector.extract_strided_slice %128 {offsets = [0, 32], sizes = [8, 32], strides = [1, 1]} : vector<8x96xf32> to vector<8x32xf32>
    %131 = vector.extract_strided_slice %128 {offsets = [0, 64], sizes = [8, 32], strides = [1, 1]} : vector<8x96xf32> to vector<8x32xf32>
    %132 = vector.extract_strided_slice %122 {offsets = [0, 96], sizes = [8, 32], strides = [1, 1]} : vector<8x128xf32> to vector<8x32xf32>
    %133 = math.tanh %132 : vector<8x32xf32>
    %134 = arith.mulf %130, %118 : vector<8x32xf32>
    %135 = arith.mulf %129, %133 : vector<8x32xf32>
    %136 = arith.addf %134, %135 : vector<8x32xf32>
    %137 = math.tanh %136 : vector<8x32xf32>
    %138 = arith.mulf %131, %137 : vector<8x32xf32>
    %c32_39 = arith.constant 32 : index
    %c0_40 = arith.constant 0 : index
    %139 = vector.load %arg5[%c32_39, %c0_40] : memref<64x32xf32, #tpu.memory_space<vmem>>, vector<8x32xf32>
    %cst_41 = arith.constant 1.000000e+00 : f32
    %140 = vector.broadcast %cst_41 : f32 to vector<8x32xf32>
    %141 = arith.subf %140, %139 : vector<8x32xf32>
    %142 = arith.mulf %139, %138 : vector<8x32xf32>
    %143 = arith.mulf %141, %115 : vector<8x32xf32>
    %144 = arith.addf %142, %143 : vector<8x32xf32>
    %145 = arith.mulf %139, %136 : vector<8x32xf32>
    %146 = arith.mulf %141, %118 : vector<8x32xf32>
    %147 = arith.addf %145, %146 : vector<8x32xf32>
    %c32_42 = arith.constant 32 : index
    %c0_43 = arith.constant 0 : index
    %148 = vector.load %arg9[%c32_42, %c0_43] : memref<64x32xf32, #tpu.memory_space<vmem>>, vector<8x32xf32>
    tpu.vector_store %arg9[%c32_42, %c0_43], %142 {strides = array<i32>} : memref<64x32xf32, #tpu.memory_space<vmem>>, vector<8x32xf32>,
    %c40 = arith.constant 40 : index
    %c0_44 = arith.constant 0 : index
    %149 = vector.load %arg1[%c40, %c0_44] : memref<64x128xf32, #tpu.memory_space<vmem>>, vector<8x128xf32>
    %cst_45 = arith.constant dense<0.000000e+00> : vector<8x128xf32>
    %150 = tpu.matmul %144, %1, %cst_45 {dimension_numbers = #tpu.dot_dimension_numbers<[1], [0], [0], [1], [0, 0, 1, 1], [], []>} : vector<8x32xf32>, vector<32x128xf32>, vector<8x128xf32> -> vector<8x128xf32>
    %151 = arith.addf %149, %150 : vector<8x128xf32>
    %152 = vector.extract_strided_slice %151 {offsets = [0, 0], sizes = [8, 96], strides = [1, 1]} : vector<8x128xf32> to vector<8x96xf32>
    %153 = arith.negf %152 : vector<8x96xf32>
    %154 = math.exp %153 : vector<8x96xf32>
    %cst_46 = arith.constant 1.000000e+00 : f32
    %155 = vector.broadcast %cst_46 : f32 to vector<8x96xf32>
    %156 = arith.addf %155, %154 : vector<8x96xf32>
    %157 = arith.divf %155, %156 : vector<8x96xf32>
    %158 = vector.extract_strided_slice %157 {offsets = [0, 0], sizes = [8, 32], strides = [1, 1]} : vector<8x96xf32> to vector<8x32xf32>
    %159 = vector.extract_strided_slice %157 {offsets = [0, 32], sizes = [8, 32], strides = [1, 1]} : vector<8x96xf32> to vector<8x32xf32>
    %160 = vector.extract_strided_slice %157 {offsets = [0, 64], sizes = [8, 32], strides = [1, 1]} : vector<8x96xf32> to vector<8x32xf32>
    %161 = vector.extract_strided_slice %151 {offsets = [0, 96], sizes = [8, 32], strides = [1, 1]} : vector<8x128xf32> to vector<8x32xf32>
    %162 = math.tanh %161 : vector<8x32xf32>
    %163 = arith.mulf %159, %147 : vector<8x32xf32>
    %164 = arith.mulf %158, %162 : vector<8x32xf32>
    %165 = arith.addf %163, %164 : vector<8x32xf32>
    %166 = math.tanh %165 : vector<8x32xf32>
    %167 = arith.mulf %160, %166 : vector<8x32xf32>
    %c40_47 = arith.constant 40 : index
    %c0_48 = arith.constant 0 : index
    %168 = vector.load %arg5[%c40_47, %c0_48] : memref<64x32xf32, #tpu.memory_space<vmem>>, vector<8x32xf32>
    %cst_49 = arith.constant 1.000000e+00 : f32
    %169 = vector.broadcast %cst_49 : f32 to vector<8x32xf32>
    %170 = arith.subf %169, %168 : vector<8x32xf32>
    %171 = arith.mulf %168, %167 : vector<8x32xf32>
    %172 = arith.mulf %170, %144 : vector<8x32xf32>
    %173 = arith.addf %171, %172 : vector<8x32xf32>
    %174 = arith.mulf %168, %165 : vector<8x32xf32>
    %175 = arith.mulf %170, %147 : vector<8x32xf32>
    %176 = arith.addf %174, %175 : vector<8x32xf32>
    %c40_50 = arith.constant 40 : index
    %c0_51 = arith.constant 0 : index
    %177 = vector.load %arg9[%c40_50, %c0_51] : memref<64x32xf32, #tpu.memory_space<vmem>>, vector<8x32xf32>
    tpu.vector_store %arg9[%c40_50, %c0_51], %171 {strides = array<i32>} : memref<64x32xf32, #tpu.memory_space<vmem>>, vector<8x32xf32>,
    %c48 = arith.constant 48 : index
    %c0_52 = arith.constant 0 : index
    %178 = vector.load %arg1[%c48, %c0_52] : memref<64x128xf32, #tpu.memory_space<vmem>>, vector<8x128xf32>
    %cst_53 = arith.constant dense<0.000000e+00> : vector<8x128xf32>
    %179 = tpu.matmul %173, %1, %cst_53 {dimension_numbers = #tpu.dot_dimension_numbers<[1], [0], [0], [1], [0, 0, 1, 1], [], []>} : vector<8x32xf32>, vector<32x128xf32>, vector<8x128xf32> -> vector<8x128xf32>
    %180 = arith.addf %178, %179 : vector<8x128xf32>
    %181 = vector.extract_strided_slice %180 {offsets = [0, 0], sizes = [8, 96], strides = [1, 1]} : vector<8x128xf32> to vector<8x96xf32>
    %182 = arith.negf %181 : vector<8x96xf32>
    %183 = math.exp %182 : vector<8x96xf32>
    %cst_54 = arith.constant 1.000000e+00 : f32
    %184 = vector.broadcast %cst_54 : f32 to vector<8x96xf32>
    %185 = arith.addf %184, %183 : vector<8x96xf32>
    %186 = arith.divf %184, %185 : vector<8x96xf32>
    %187 = vector.extract_strided_slice %186 {offsets = [0, 0], sizes = [8, 32], strides = [1, 1]} : vector<8x96xf32> to vector<8x32xf32>
    %188 = vector.extract_strided_slice %186 {offsets = [0, 32], sizes = [8, 32], strides = [1, 1]} : vector<8x96xf32> to vector<8x32xf32>
    %189 = vector.extract_strided_slice %186 {offsets = [0, 64], sizes = [8, 32], strides = [1, 1]} : vector<8x96xf32> to vector<8x32xf32>
    %190 = vector.extract_strided_slice %180 {offsets = [0, 96], sizes = [8, 32], strides = [1, 1]} : vector<8x128xf32> to vector<8x32xf32>
    %191 = math.tanh %190 : vector<8x32xf32>
    %192 = arith.mulf %188, %176 : vector<8x32xf32>
    %193 = arith.mulf %187, %191 : vector<8x32xf32>
    %194 = arith.addf %192, %193 : vector<8x32xf32>
    %195 = math.tanh %194 : vector<8x32xf32>
    %196 = arith.mulf %189, %195 : vector<8x32xf32>
    %c48_55 = arith.constant 48 : index
    %c0_56 = arith.constant 0 : index
    %197 = vector.load %arg5[%c48_55, %c0_56] : memref<64x32xf32, #tpu.memory_space<vmem>>, vector<8x32xf32>
    %cst_57 = arith.constant 1.000000e+00 : f32
    %198 = vector.broadcast %cst_57 : f32 to vector<8x32xf32>
    %199 = arith.subf %198, %197 : vector<8x32xf32>
    %200 = arith.mulf %197, %196 : vector<8x32xf32>
    %201 = arith.mulf %199, %173 : vector<8x32xf32>
    %202 = arith.addf %200, %201 : vector<8x32xf32>
    %203 = arith.mulf %197, %194 : vector<8x32xf32>
    %204 = arith.mulf %199, %176 : vector<8x32xf32>
    %205 = arith.addf %203, %204 : vector<8x32xf32>
    %c48_58 = arith.constant 48 : index
    %c0_59 = arith.constant 0 : index
    %206 = vector.load %arg9[%c48_58, %c0_59] : memref<64x32xf32, #tpu.memory_space<vmem>>, vector<8x32xf32>
    tpu.vector_store %arg9[%c48_58, %c0_59], %200 {strides = array<i32>} : memref<64x32xf32, #tpu.memory_space<vmem>>, vector<8x32xf32>,
    %c56 = arith.constant 56 : index
    %c0_60 = arith.constant 0 : index
    %207 = vector.load %arg1[%c56, %c0_60] : memref<64x128xf32, #tpu.memory_space<vmem>>, vector<8x128xf32>
    %cst_61 = arith.constant dense<0.000000e+00> : vector<8x128xf32>
    %208 = tpu.matmul %202, %1, %cst_61 {dimension_numbers = #tpu.dot_dimension_numbers<[1], [0], [0], [1], [0, 0, 1, 1], [], []>} : vector<8x32xf32>, vector<32x128xf32>, vector<8x128xf32> -> vector<8x128xf32>
    %209 = arith.addf %207, %208 : vector<8x128xf32>
    %210 = vector.extract_strided_slice %209 {offsets = [0, 0], sizes = [8, 96], strides = [1, 1]} : vector<8x128xf32> to vector<8x96xf32>
    %211 = arith.negf %210 : vector<8x96xf32>
    %212 = math.exp %211 : vector<8x96xf32>
    %cst_62 = arith.constant 1.000000e+00 : f32
    %213 = vector.broadcast %cst_62 : f32 to vector<8x96xf32>
    %214 = arith.addf %213, %212 : vector<8x96xf32>
    %215 = arith.divf %213, %214 : vector<8x96xf32>
    %216 = vector.extract_strided_slice %215 {offsets = [0, 0], sizes = [8, 32], strides = [1, 1]} : vector<8x96xf32> to vector<8x32xf32>
    %217 = vector.extract_strided_slice %215 {offsets = [0, 32], sizes = [8, 32], strides = [1, 1]} : vector<8x96xf32> to vector<8x32xf32>
    %218 = vector.extract_strided_slice %215 {offsets = [0, 64], sizes = [8, 32], strides = [1, 1]} : vector<8x96xf32> to vector<8x32xf32>
    %219 = vector.extract_strided_slice %209 {offsets = [0, 96], sizes = [8, 32], strides = [1, 1]} : vector<8x128xf32> to vector<8x32xf32>
    %220 = math.tanh %219 : vector<8x32xf32>
    %221 = arith.mulf %217, %205 : vector<8x32xf32>
    %222 = arith.mulf %216, %220 : vector<8x32xf32>
    %223 = arith.addf %221, %222 : vector<8x32xf32>
    %224 = math.tanh %223 : vector<8x32xf32>
    %225 = arith.mulf %218, %224 : vector<8x32xf32>
    %c56_63 = arith.constant 56 : index
    %c0_64 = arith.constant 0 : index
    %226 = vector.load %arg5[%c56_63, %c0_64] : memref<64x32xf32, #tpu.memory_space<vmem>>, vector<8x32xf32>
    %cst_65 = arith.constant 1.000000e+00 : f32
    %227 = vector.broadcast %cst_65 : f32 to vector<8x32xf32>
    %228 = arith.subf %227, %226 : vector<8x32xf32>
    %229 = arith.mulf %226, %225 : vector<8x32xf32>
    %230 = arith.mulf %228, %202 : vector<8x32xf32>
    %231 = arith.addf %229, %230 : vector<8x32xf32>
    %232 = arith.mulf %226, %223 : vector<8x32xf32>
    %233 = arith.mulf %228, %205 : vector<8x32xf32>
    %234 = arith.addf %232, %233 : vector<8x32xf32>
    %c56_66 = arith.constant 56 : index
    %c0_67 = arith.constant 0 : index
    %235 = vector.load %arg9[%c56_66, %c0_67] : memref<64x32xf32, #tpu.memory_space<vmem>>, vector<8x32xf32>
    tpu.vector_store %arg9[%c56_66, %c0_67], %229 {strides = array<i32>} : memref<64x32xf32, #tpu.memory_space<vmem>>, vector<8x32xf32>,
    %cst_68 = arith.constant -5.000000e-01 : f32
    %cst_69 = arith.constant 5.000000e-01 : f32
    %236 = vector.broadcast %cst_68 : f32 to vector<8x32xf32>
    %237 = arith.maximumf %236, %231 : vector<8x32xf32>
    %238 = vector.broadcast %cst_69 : f32 to vector<8x32xf32>
    %239 = arith.minimumf %238, %237 : vector<8x32xf32>
    %c0_70 = arith.constant 0 : index
    %c0_71 = arith.constant 0 : index
    %c0_72 = arith.constant 0 : index
    %240 = vector.load %arg7[%c0_70, %c0_71, %c0_72] : memref<2x8x32xf32, #tpu.memory_space<vmem>>, vector<1x8x32xf32>
    %241 = vector.shape_cast %240 : vector<1x8x32xf32> to vector<8x32xf32>
    %242 = vector.shape_cast %239 : vector<8x32xf32> to vector<1x8x32xf32>
    tpu.vector_store %arg7[%c0_70, %c0_71, %c0_72], %242 {strides = array<i32>} : memref<2x8x32xf32, #tpu.memory_space<vmem>>, vector<1x8x32xf32>,
    %cst_73 = arith.constant -5.000000e-01 : f32
    %cst_74 = arith.constant 5.000000e-01 : f32
    %243 = vector.broadcast %cst_73 : f32 to vector<8x32xf32>
    %244 = arith.maximumf %243, %234 : vector<8x32xf32>
    %245 = vector.broadcast %cst_74 : f32 to vector<8x32xf32>
    %246 = arith.minimumf %245, %244 : vector<8x32xf32>
    %c0_75 = arith.constant 0 : index
    %c0_76 = arith.constant 0 : index
    %c0_77 = arith.constant 0 : index
    %247 = vector.load %arg8[%c0_75, %c0_76, %c0_77] : memref<2x8x32xf32, #tpu.memory_space<vmem>>, vector<1x8x32xf32>
    %248 = vector.shape_cast %247 : vector<1x8x32xf32> to vector<8x32xf32>
    %249 = vector.shape_cast %246 : vector<8x32xf32> to vector<1x8x32xf32>
    tpu.vector_store %arg8[%c0_75, %c0_76, %c0_77], %249 {strides = array<i32>} : memref<2x8x32xf32, #tpu.memory_space<vmem>>, vector<1x8x32xf32>,
    %c0_78 = arith.constant 0 : index
    %c0_79 = arith.constant 0 : index
    %250 = vector.load %arg9[%c0_78, %c0_79] : memref<64x32xf32, #tpu.memory_space<vmem>>, vector<64x32xf32>
    %c0_80 = arith.constant 0 : index
    %c0_81 = arith.constant 0 : index
    %c0_82 = arith.constant 0 : index
    %251 = vector.load %arg2[%c0_80, %c0_81, %c0_82] : memref<1x32x128xf32, #tpu.memory_space<vmem>>, vector<1x32x128xf32>
    %252 = vector.shape_cast %251 : vector<1x32x128xf32> to vector<32x128xf32>
    %cst_83 = arith.constant dense<0.000000e+00> : vector<64x128xf32>
    %253 = tpu.matmul %250, %252, %cst_83 {dimension_numbers = #tpu.dot_dimension_numbers<[1], [0], [0], [1], [0, 0, 1, 1], [], []>} : vector<64x32xf32>, vector<32x128xf32>, vector<64x128xf32> -> vector<64x128xf32>
    %c0_84 = arith.constant 0 : index
    %c0_85 = arith.constant 0 : index
    %c0_86 = arith.constant 0 : index
    %254 = vector.load %arg4[%c0_84, %c0_85, %c0_86] : memref<1x1x128xf32, #tpu.memory_space<vmem>>, vector<1x1x128xf32>
    %255 = vector.shape_cast %254 : vector<1x1x128xf32> to vector<1x128xf32>
    %256 = vector.broadcast %255 : vector<1x128xf32> to vector<64x128xf32>
    %257 = arith.addf %253, %256 : vector<64x128xf32>
    %c0_87 = arith.constant 0 : index
    %c0_88 = arith.constant 0 : index
    %258 = vector.load %arg10[%c0_87, %c0_88] : memref<64x128xf32, #tpu.memory_space<vmem>>, vector<64x128xf32>
    tpu.vector_store %arg10[%c0_87, %c0_88], %257 {strides = array<i32>} : memref<64x128xf32, #tpu.memory_space<vmem>>, vector<64x128xf32>,
    %c1 = arith.constant 1 : index
    %c0_89 = arith.constant 0 : index
    %c0_90 = arith.constant 0 : index
    %259 = vector.load %arg3[%c1, %c0_89, %c0_90] : memref<2x32x128xf32, #tpu.memory_space<vmem>>, vector<1x32x128xf32>
    %260 = vector.shape_cast %259 : vector<1x32x128xf32> to vector<32x128xf32>
    %cst_91 = arith.constant 0.000000e+00 : f32
    %261 = vector.broadcast %cst_91 : f32 to vector<8x32xf32>
    %cst_92 = arith.constant 0.000000e+00 : f32
    %262 = vector.broadcast %cst_92 : f32 to vector<8x32xf32>
    %c0_93 = arith.constant 0 : index
    %c0_94 = arith.constant 0 : index
    %263 = vector.load %arg10[%c0_93, %c0_94] : memref<64x128xf32, #tpu.memory_space<vmem>>, vector<8x128xf32>
    %cst_95 = arith.constant dense<0.000000e+00> : vector<8x128xf32>
    %264 = tpu.matmul %261, %260, %cst_95 {dimension_numbers = #tpu.dot_dimension_numbers<[1], [0], [0], [1], [0, 0, 1, 1], [], []>} : vector<8x32xf32>, vector<32x128xf32>, vector<8x128xf32> -> vector<8x128xf32>
    %265 = arith.addf %263, %264 : vector<8x128xf32>
    %266 = vector.extract_strided_slice %265 {offsets = [0, 0], sizes = [8, 96], strides = [1, 1]} : vector<8x128xf32> to vector<8x96xf32>
    %267 = arith.negf %266 : vector<8x96xf32>
    %268 = math.exp %267 : vector<8x96xf32>
    %cst_96 = arith.constant 1.000000e+00 : f32
    %269 = vector.broadcast %cst_96 : f32 to vector<8x96xf32>
    %270 = arith.addf %269, %268 : vector<8x96xf32>
    %271 = arith.divf %269, %270 : vector<8x96xf32>
    %272 = vector.extract_strided_slice %271 {offsets = [0, 0], sizes = [8, 32], strides = [1, 1]} : vector<8x96xf32> to vector<8x32xf32>
    %273 = vector.extract_strided_slice %271 {offsets = [0, 32], sizes = [8, 32], strides = [1, 1]} : vector<8x96xf32> to vector<8x32xf32>
    %274 = vector.extract_strided_slice %271 {offsets = [0, 64], sizes = [8, 32], strides = [1, 1]} : vector<8x96xf32> to vector<8x32xf32>
    %275 = vector.extract_strided_slice %265 {offsets = [0, 96], sizes = [8, 32], strides = [1, 1]} : vector<8x128xf32> to vector<8x32xf32>
    %276 = math.tanh %275 : vector<8x32xf32>
    %277 = arith.mulf %273, %262 : vector<8x32xf32>
    %278 = arith.mulf %272, %276 : vector<8x32xf32>
    %279 = arith.addf %277, %278 : vector<8x32xf32>
    %280 = math.tanh %279 : vector<8x32xf32>
    %281 = arith.mulf %274, %280 : vector<8x32xf32>
    %c0_97 = arith.constant 0 : index
    %c0_98 = arith.constant 0 : index
    %282 = vector.load %arg5[%c0_97, %c0_98] : memref<64x32xf32, #tpu.memory_space<vmem>>, vector<8x32xf32>
    %cst_99 = arith.constant 1.000000e+00 : f32
    %283 = vector.broadcast %cst_99 : f32 to vector<8x32xf32>
    %284 = arith.subf %283, %282 : vector<8x32xf32>
    %285 = arith.mulf %282, %281 : vector<8x32xf32>
    %286 = arith.mulf %284, %261 : vector<8x32xf32>
    %287 = arith.addf %285, %286 : vector<8x32xf32>
    %288 = arith.mulf %282, %279 : vector<8x32xf32>
    %289 = arith.mulf %284, %262 : vector<8x32xf32>
    %290 = arith.addf %288, %289 : vector<8x32xf32>
    %c0_100 = arith.constant 0 : index
    %c0_101 = arith.constant 0 : index
    %c0_102 = arith.constant 0 : index
    %291 = vector.load %arg6[%c0_100, %c0_101, %c0_102] : memref<8x8x32xf32, #tpu.memory_space<vmem>>, vector<8x1x32xf32>
    %292 = vector.shape_cast %291 : vector<8x1x32xf32> to vector<8x32xf32>
    %293 = vector.shape_cast %285 : vector<8x32xf32> to vector<8x1x32xf32>
    tpu.vector_store %arg6[%c0_100, %c0_101, %c0_102], %293 {strides = array<i32>} : memref<8x8x32xf32, #tpu.memory_space<vmem>>, vector<8x1x32xf32>,
    %c8_103 = arith.constant 8 : index
    %c0_104 = arith.constant 0 : index
    %294 = vector.load %arg10[%c8_103, %c0_104] : memref<64x128xf32, #tpu.memory_space<vmem>>, vector<8x128xf32>
    %cst_105 = arith.constant dense<0.000000e+00> : vector<8x128xf32>
    %295 = tpu.matmul %287, %260, %cst_105 {dimension_numbers = #tpu.dot_dimension_numbers<[1], [0], [0], [1], [0, 0, 1, 1], [], []>} : vector<8x32xf32>, vector<32x128xf32>, vector<8x128xf32> -> vector<8x128xf32>
    %296 = arith.addf %294, %295 : vector<8x128xf32>
    %297 = vector.extract_strided_slice %296 {offsets = [0, 0], sizes = [8, 96], strides = [1, 1]} : vector<8x128xf32> to vector<8x96xf32>
    %298 = arith.negf %297 : vector<8x96xf32>
    %299 = math.exp %298 : vector<8x96xf32>
    %cst_106 = arith.constant 1.000000e+00 : f32
    %300 = vector.broadcast %cst_106 : f32 to vector<8x96xf32>
    %301 = arith.addf %300, %299 : vector<8x96xf32>
    %302 = arith.divf %300, %301 : vector<8x96xf32>
    %303 = vector.extract_strided_slice %302 {offsets = [0, 0], sizes = [8, 32], strides = [1, 1]} : vector<8x96xf32> to vector<8x32xf32>
    %304 = vector.extract_strided_slice %302 {offsets = [0, 32], sizes = [8, 32], strides = [1, 1]} : vector<8x96xf32> to vector<8x32xf32>
    %305 = vector.extract_strided_slice %302 {offsets = [0, 64], sizes = [8, 32], strides = [1, 1]} : vector<8x96xf32> to vector<8x32xf32>
    %306 = vector.extract_strided_slice %296 {offsets = [0, 96], sizes = [8, 32], strides = [1, 1]} : vector<8x128xf32> to vector<8x32xf32>
    %307 = math.tanh %306 : vector<8x32xf32>
    %308 = arith.mulf %304, %290 : vector<8x32xf32>
    %309 = arith.mulf %303, %307 : vector<8x32xf32>
    %310 = arith.addf %308, %309 : vector<8x32xf32>
    %311 = math.tanh %310 : vector<8x32xf32>
    %312 = arith.mulf %305, %311 : vector<8x32xf32>
    %c8_107 = arith.constant 8 : index
    %c0_108 = arith.constant 0 : index
    %313 = vector.load %arg5[%c8_107, %c0_108] : memref<64x32xf32, #tpu.memory_space<vmem>>, vector<8x32xf32>
    %cst_109 = arith.constant 1.000000e+00 : f32
    %314 = vector.broadcast %cst_109 : f32 to vector<8x32xf32>
    %315 = arith.subf %314, %313 : vector<8x32xf32>
    %316 = arith.mulf %313, %312 : vector<8x32xf32>
    %317 = arith.mulf %315, %287 : vector<8x32xf32>
    %318 = arith.addf %316, %317 : vector<8x32xf32>
    %319 = arith.mulf %313, %310 : vector<8x32xf32>
    %320 = arith.mulf %315, %290 : vector<8x32xf32>
    %321 = arith.addf %319, %320 : vector<8x32xf32>
    %c0_110 = arith.constant 0 : index
    %c1_111 = arith.constant 1 : index
    %c0_112 = arith.constant 0 : index
    %322 = vector.load %arg6[%c0_110, %c1_111, %c0_112] : memref<8x8x32xf32, #tpu.memory_space<vmem>>, vector<8x1x32xf32>
    %323 = vector.shape_cast %322 : vector<8x1x32xf32> to vector<8x32xf32>
    %324 = vector.shape_cast %316 : vector<8x32xf32> to vector<8x1x32xf32>
    tpu.vector_store %arg6[%c0_110, %c1_111, %c0_112], %324 {strides = array<i32>} : memref<8x8x32xf32, #tpu.memory_space<vmem>>, vector<8x1x32xf32>,
    %c16_113 = arith.constant 16 : index
    %c0_114 = arith.constant 0 : index
    %325 = vector.load %arg10[%c16_113, %c0_114] : memref<64x128xf32, #tpu.memory_space<vmem>>, vector<8x128xf32>
    %cst_115 = arith.constant dense<0.000000e+00> : vector<8x128xf32>
    %326 = tpu.matmul %318, %260, %cst_115 {dimension_numbers = #tpu.dot_dimension_numbers<[1], [0], [0], [1], [0, 0, 1, 1], [], []>} : vector<8x32xf32>, vector<32x128xf32>, vector<8x128xf32> -> vector<8x128xf32>
    %327 = arith.addf %325, %326 : vector<8x128xf32>
    %328 = vector.extract_strided_slice %327 {offsets = [0, 0], sizes = [8, 96], strides = [1, 1]} : vector<8x128xf32> to vector<8x96xf32>
    %329 = arith.negf %328 : vector<8x96xf32>
    %330 = math.exp %329 : vector<8x96xf32>
    %cst_116 = arith.constant 1.000000e+00 : f32
    %331 = vector.broadcast %cst_116 : f32 to vector<8x96xf32>
    %332 = arith.addf %331, %330 : vector<8x96xf32>
    %333 = arith.divf %331, %332 : vector<8x96xf32>
    %334 = vector.extract_strided_slice %333 {offsets = [0, 0], sizes = [8, 32], strides = [1, 1]} : vector<8x96xf32> to vector<8x32xf32>
    %335 = vector.extract_strided_slice %333 {offsets = [0, 32], sizes = [8, 32], strides = [1, 1]} : vector<8x96xf32> to vector<8x32xf32>
    %336 = vector.extract_strided_slice %333 {offsets = [0, 64], sizes = [8, 32], strides = [1, 1]} : vector<8x96xf32> to vector<8x32xf32>
    %337 = vector.extract_strided_slice %327 {offsets = [0, 96], sizes = [8, 32], strides = [1, 1]} : vector<8x128xf32> to vector<8x32xf32>
    %338 = math.tanh %337 : vector<8x32xf32>
    %339 = arith.mulf %335, %321 : vector<8x32xf32>
    %340 = arith.mulf %334, %338 : vector<8x32xf32>
    %341 = arith.addf %339, %340 : vector<8x32xf32>
    %342 = math.tanh %341 : vector<8x32xf32>
    %343 = arith.mulf %336, %342 : vector<8x32xf32>
    %c16_117 = arith.constant 16 : index
    %c0_118 = arith.constant 0 : index
    %344 = vector.load %arg5[%c16_117, %c0_118] : memref<64x32xf32, #tpu.memory_space<vmem>>, vector<8x32xf32>
    %cst_119 = arith.constant 1.000000e+00 : f32
    %345 = vector.broadcast %cst_119 : f32 to vector<8x32xf32>
    %346 = arith.subf %345, %344 : vector<8x32xf32>
    %347 = arith.mulf %344, %343 : vector<8x32xf32>
    %348 = arith.mulf %346, %318 : vector<8x32xf32>
    %349 = arith.addf %347, %348 : vector<8x32xf32>
    %350 = arith.mulf %344, %341 : vector<8x32xf32>
    %351 = arith.mulf %346, %321 : vector<8x32xf32>
    %352 = arith.addf %350, %351 : vector<8x32xf32>
    %c0_120 = arith.constant 0 : index
    %c2 = arith.constant 2 : index
    %c0_121 = arith.constant 0 : index
    %353 = vector.load %arg6[%c0_120, %c2, %c0_121] : memref<8x8x32xf32, #tpu.memory_space<vmem>>, vector<8x1x32xf32>
    %354 = vector.shape_cast %353 : vector<8x1x32xf32> to vector<8x32xf32>
    %355 = vector.shape_cast %347 : vector<8x32xf32> to vector<8x1x32xf32>
    tpu.vector_store %arg6[%c0_120, %c2, %c0_121], %355 {strides = array<i32>} : memref<8x8x32xf32, #tpu.memory_space<vmem>>, vector<8x1x32xf32>,
    %c24_122 = arith.constant 24 : index
    %c0_123 = arith.constant 0 : index
    %356 = vector.load %arg10[%c24_122, %c0_123] : memref<64x128xf32, #tpu.memory_space<vmem>>, vector<8x128xf32>
    %cst_124 = arith.constant dense<0.000000e+00> : vector<8x128xf32>
    %357 = tpu.matmul %349, %260, %cst_124 {dimension_numbers = #tpu.dot_dimension_numbers<[1], [0], [0], [1], [0, 0, 1, 1], [], []>} : vector<8x32xf32>, vector<32x128xf32>, vector<8x128xf32> -> vector<8x128xf32>
    %358 = arith.addf %356, %357 : vector<8x128xf32>
    %359 = vector.extract_strided_slice %358 {offsets = [0, 0], sizes = [8, 96], strides = [1, 1]} : vector<8x128xf32> to vector<8x96xf32>
    %360 = arith.negf %359 : vector<8x96xf32>
    %361 = math.exp %360 : vector<8x96xf32>
    %cst_125 = arith.constant 1.000000e+00 : f32
    %362 = vector.broadcast %cst_125 : f32 to vector<8x96xf32>
    %363 = arith.addf %362, %361 : vector<8x96xf32>
    %364 = arith.divf %362, %363 : vector<8x96xf32>
    %365 = vector.extract_strided_slice %364 {offsets = [0, 0], sizes = [8, 32], strides = [1, 1]} : vector<8x96xf32> to vector<8x32xf32>
    %366 = vector.extract_strided_slice %364 {offsets = [0, 32], sizes = [8, 32], strides = [1, 1]} : vector<8x96xf32> to vector<8x32xf32>
    %367 = vector.extract_strided_slice %364 {offsets = [0, 64], sizes = [8, 32], strides = [1, 1]} : vector<8x96xf32> to vector<8x32xf32>
    %368 = vector.extract_strided_slice %358 {offsets = [0, 96], sizes = [8, 32], strides = [1, 1]} : vector<8x128xf32> to vector<8x32xf32>
    %369 = math.tanh %368 : vector<8x32xf32>
    %370 = arith.mulf %366, %352 : vector<8x32xf32>
    %371 = arith.mulf %365, %369 : vector<8x32xf32>
    %372 = arith.addf %370, %371 : vector<8x32xf32>
    %373 = math.tanh %372 : vector<8x32xf32>
    %374 = arith.mulf %367, %373 : vector<8x32xf32>
    %c24_126 = arith.constant 24 : index
    %c0_127 = arith.constant 0 : index
    %375 = vector.load %arg5[%c24_126, %c0_127] : memref<64x32xf32, #tpu.memory_space<vmem>>, vector<8x32xf32>
    %cst_128 = arith.constant 1.000000e+00 : f32
    %376 = vector.broadcast %cst_128 : f32 to vector<8x32xf32>
    %377 = arith.subf %376, %375 : vector<8x32xf32>
    %378 = arith.mulf %375, %374 : vector<8x32xf32>
    %379 = arith.mulf %377, %349 : vector<8x32xf32>
    %380 = arith.addf %378, %379 : vector<8x32xf32>
    %381 = arith.mulf %375, %372 : vector<8x32xf32>
    %382 = arith.mulf %377, %352 : vector<8x32xf32>
    %383 = arith.addf %381, %382 : vector<8x32xf32>
    %c0_129 = arith.constant 0 : index
    %c3 = arith.constant 3 : index
    %c0_130 = arith.constant 0 : index
    %384 = vector.load %arg6[%c0_129, %c3, %c0_130] : memref<8x8x32xf32, #tpu.memory_space<vmem>>, vector<8x1x32xf32>
    %385 = vector.shape_cast %384 : vector<8x1x32xf32> to vector<8x32xf32>
    %386 = vector.shape_cast %378 : vector<8x32xf32> to vector<8x1x32xf32>
    tpu.vector_store %arg6[%c0_129, %c3, %c0_130], %386 {strides = array<i32>} : memref<8x8x32xf32, #tpu.memory_space<vmem>>, vector<8x1x32xf32>,
    %c32_131 = arith.constant 32 : index
    %c0_132 = arith.constant 0 : index
    %387 = vector.load %arg10[%c32_131, %c0_132] : memref<64x128xf32, #tpu.memory_space<vmem>>, vector<8x128xf32>
    %cst_133 = arith.constant dense<0.000000e+00> : vector<8x128xf32>
    %388 = tpu.matmul %380, %260, %cst_133 {dimension_numbers = #tpu.dot_dimension_numbers<[1], [0], [0], [1], [0, 0, 1, 1], [], []>} : vector<8x32xf32>, vector<32x128xf32>, vector<8x128xf32> -> vector<8x128xf32>
    %389 = arith.addf %387, %388 : vector<8x128xf32>
    %390 = vector.extract_strided_slice %389 {offsets = [0, 0], sizes = [8, 96], strides = [1, 1]} : vector<8x128xf32> to vector<8x96xf32>
    %391 = arith.negf %390 : vector<8x96xf32>
    %392 = math.exp %391 : vector<8x96xf32>
    %cst_134 = arith.constant 1.000000e+00 : f32
    %393 = vector.broadcast %cst_134 : f32 to vector<8x96xf32>
    %394 = arith.addf %393, %392 : vector<8x96xf32>
    %395 = arith.divf %393, %394 : vector<8x96xf32>
    %396 = vector.extract_strided_slice %395 {offsets = [0, 0], sizes = [8, 32], strides = [1, 1]} : vector<8x96xf32> to vector<8x32xf32>
    %397 = vector.extract_strided_slice %395 {offsets = [0, 32], sizes = [8, 32], strides = [1, 1]} : vector<8x96xf32> to vector<8x32xf32>
    %398 = vector.extract_strided_slice %395 {offsets = [0, 64], sizes = [8, 32], strides = [1, 1]} : vector<8x96xf32> to vector<8x32xf32>
    %399 = vector.extract_strided_slice %389 {offsets = [0, 96], sizes = [8, 32], strides = [1, 1]} : vector<8x128xf32> to vector<8x32xf32>
    %400 = math.tanh %399 : vector<8x32xf32>
    %401 = arith.mulf %397, %383 : vector<8x32xf32>
    %402 = arith.mulf %396, %400 : vector<8x32xf32>
    %403 = arith.addf %401, %402 : vector<8x32xf32>
    %404 = math.tanh %403 : vector<8x32xf32>
    %405 = arith.mulf %398, %404 : vector<8x32xf32>
    %c32_135 = arith.constant 32 : index
    %c0_136 = arith.constant 0 : index
    %406 = vector.load %arg5[%c32_135, %c0_136] : memref<64x32xf32, #tpu.memory_space<vmem>>, vector<8x32xf32>
    %cst_137 = arith.constant 1.000000e+00 : f32
    %407 = vector.broadcast %cst_137 : f32 to vector<8x32xf32>
    %408 = arith.subf %407, %406 : vector<8x32xf32>
    %409 = arith.mulf %406, %405 : vector<8x32xf32>
    %410 = arith.mulf %408, %380 : vector<8x32xf32>
    %411 = arith.addf %409, %410 : vector<8x32xf32>
    %412 = arith.mulf %406, %403 : vector<8x32xf32>
    %413 = arith.mulf %408, %383 : vector<8x32xf32>
    %414 = arith.addf %412, %413 : vector<8x32xf32>
    %c0_138 = arith.constant 0 : index
    %c4 = arith.constant 4 : index
    %c0_139 = arith.constant 0 : index
    %415 = vector.load %arg6[%c0_138, %c4, %c0_139] : memref<8x8x32xf32, #tpu.memory_space<vmem>>, vector<8x1x32xf32>
    %416 = vector.shape_cast %415 : vector<8x1x32xf32> to vector<8x32xf32>
    %417 = vector.shape_cast %409 : vector<8x32xf32> to vector<8x1x32xf32>
    tpu.vector_store %arg6[%c0_138, %c4, %c0_139], %417 {strides = array<i32>} : memref<8x8x32xf32, #tpu.memory_space<vmem>>, vector<8x1x32xf32>,
    %c40_140 = arith.constant 40 : index
    %c0_141 = arith.constant 0 : index
    %418 = vector.load %arg10[%c40_140, %c0_141] : memref<64x128xf32, #tpu.memory_space<vmem>>, vector<8x128xf32>
    %cst_142 = arith.constant dense<0.000000e+00> : vector<8x128xf32>
    %419 = tpu.matmul %411, %260, %cst_142 {dimension_numbers = #tpu.dot_dimension_numbers<[1], [0], [0], [1], [0, 0, 1, 1], [], []>} : vector<8x32xf32>, vector<32x128xf32>, vector<8x128xf32> -> vector<8x128xf32>
    %420 = arith.addf %418, %419 : vector<8x128xf32>
    %421 = vector.extract_strided_slice %420 {offsets = [0, 0], sizes = [8, 96], strides = [1, 1]} : vector<8x128xf32> to vector<8x96xf32>
    %422 = arith.negf %421 : vector<8x96xf32>
    %423 = math.exp %422 : vector<8x96xf32>
    %cst_143 = arith.constant 1.000000e+00 : f32
    %424 = vector.broadcast %cst_143 : f32 to vector<8x96xf32>
    %425 = arith.addf %424, %423 : vector<8x96xf32>
    %426 = arith.divf %424, %425 : vector<8x96xf32>
    %427 = vector.extract_strided_slice %426 {offsets = [0, 0], sizes = [8, 32], strides = [1, 1]} : vector<8x96xf32> to vector<8x32xf32>
    %428 = vector.extract_strided_slice %426 {offsets = [0, 32], sizes = [8, 32], strides = [1, 1]} : vector<8x96xf32> to vector<8x32xf32>
    %429 = vector.extract_strided_slice %426 {offsets = [0, 64], sizes = [8, 32], strides = [1, 1]} : vector<8x96xf32> to vector<8x32xf32>
    %430 = vector.extract_strided_slice %420 {offsets = [0, 96], sizes = [8, 32], strides = [1, 1]} : vector<8x128xf32> to vector<8x32xf32>
    %431 = math.tanh %430 : vector<8x32xf32>
    %432 = arith.mulf %428, %414 : vector<8x32xf32>
    %433 = arith.mulf %427, %431 : vector<8x32xf32>
    %434 = arith.addf %432, %433 : vector<8x32xf32>
    %435 = math.tanh %434 : vector<8x32xf32>
    %436 = arith.mulf %429, %435 : vector<8x32xf32>
    %c40_144 = arith.constant 40 : index
    %c0_145 = arith.constant 0 : index
    %437 = vector.load %arg5[%c40_144, %c0_145] : memref<64x32xf32, #tpu.memory_space<vmem>>, vector<8x32xf32>
    %cst_146 = arith.constant 1.000000e+00 : f32
    %438 = vector.broadcast %cst_146 : f32 to vector<8x32xf32>
    %439 = arith.subf %438, %437 : vector<8x32xf32>
    %440 = arith.mulf %437, %436 : vector<8x32xf32>
    %441 = arith.mulf %439, %411 : vector<8x32xf32>
    %442 = arith.addf %440, %441 : vector<8x32xf32>
    %443 = arith.mulf %437, %434 : vector<8x32xf32>
    %444 = arith.mulf %439, %414 : vector<8x32xf32>
    %445 = arith.addf %443, %444 : vector<8x32xf32>
    %c0_147 = arith.constant 0 : index
    %c5 = arith.constant 5 : index
    %c0_148 = arith.constant 0 : index
    %446 = vector.load %arg6[%c0_147, %c5, %c0_148] : memref<8x8x32xf32, #tpu.memory_space<vmem>>, vector<8x1x32xf32>
    %447 = vector.shape_cast %446 : vector<8x1x32xf32> to vector<8x32xf32>
    %448 = vector.shape_cast %440 : vector<8x32xf32> to vector<8x1x32xf32>
    tpu.vector_store %arg6[%c0_147, %c5, %c0_148], %448 {strides = array<i32>} : memref<8x8x32xf32, #tpu.memory_space<vmem>>, vector<8x1x32xf32>,
    %c48_149 = arith.constant 48 : index
    %c0_150 = arith.constant 0 : index
    %449 = vector.load %arg10[%c48_149, %c0_150] : memref<64x128xf32, #tpu.memory_space<vmem>>, vector<8x128xf32>
    %cst_151 = arith.constant dense<0.000000e+00> : vector<8x128xf32>
    %450 = tpu.matmul %442, %260, %cst_151 {dimension_numbers = #tpu.dot_dimension_numbers<[1], [0], [0], [1], [0, 0, 1, 1], [], []>} : vector<8x32xf32>, vector<32x128xf32>, vector<8x128xf32> -> vector<8x128xf32>
    %451 = arith.addf %449, %450 : vector<8x128xf32>
    %452 = vector.extract_strided_slice %451 {offsets = [0, 0], sizes = [8, 96], strides = [1, 1]} : vector<8x128xf32> to vector<8x96xf32>
    %453 = arith.negf %452 : vector<8x96xf32>
    %454 = math.exp %453 : vector<8x96xf32>
    %cst_152 = arith.constant 1.000000e+00 : f32
    %455 = vector.broadcast %cst_152 : f32 to vector<8x96xf32>
    %456 = arith.addf %455, %454 : vector<8x96xf32>
    %457 = arith.divf %455, %456 : vector<8x96xf32>
    %458 = vector.extract_strided_slice %457 {offsets = [0, 0], sizes = [8, 32], strides = [1, 1]} : vector<8x96xf32> to vector<8x32xf32>
    %459 = vector.extract_strided_slice %457 {offsets = [0, 32], sizes = [8, 32], strides = [1, 1]} : vector<8x96xf32> to vector<8x32xf32>
    %460 = vector.extract_strided_slice %457 {offsets = [0, 64], sizes = [8, 32], strides = [1, 1]} : vector<8x96xf32> to vector<8x32xf32>
    %461 = vector.extract_strided_slice %451 {offsets = [0, 96], sizes = [8, 32], strides = [1, 1]} : vector<8x128xf32> to vector<8x32xf32>
    %462 = math.tanh %461 : vector<8x32xf32>
    %463 = arith.mulf %459, %445 : vector<8x32xf32>
    %464 = arith.mulf %458, %462 : vector<8x32xf32>
    %465 = arith.addf %463, %464 : vector<8x32xf32>
    %466 = math.tanh %465 : vector<8x32xf32>
    %467 = arith.mulf %460, %466 : vector<8x32xf32>
    %c48_153 = arith.constant 48 : index
    %c0_154 = arith.constant 0 : index
    %468 = vector.load %arg5[%c48_153, %c0_154] : memref<64x32xf32, #tpu.memory_space<vmem>>, vector<8x32xf32>
    %cst_155 = arith.constant 1.000000e+00 : f32
    %469 = vector.broadcast %cst_155 : f32 to vector<8x32xf32>
    %470 = arith.subf %469, %468 : vector<8x32xf32>
    %471 = arith.mulf %468, %467 : vector<8x32xf32>
    %472 = arith.mulf %470, %442 : vector<8x32xf32>
    %473 = arith.addf %471, %472 : vector<8x32xf32>
    %474 = arith.mulf %468, %465 : vector<8x32xf32>
    %475 = arith.mulf %470, %445 : vector<8x32xf32>
    %476 = arith.addf %474, %475 : vector<8x32xf32>
    %c0_156 = arith.constant 0 : index
    %c6 = arith.constant 6 : index
    %c0_157 = arith.constant 0 : index
    %477 = vector.load %arg6[%c0_156, %c6, %c0_157] : memref<8x8x32xf32, #tpu.memory_space<vmem>>, vector<8x1x32xf32>
    %478 = vector.shape_cast %477 : vector<8x1x32xf32> to vector<8x32xf32>
    %479 = vector.shape_cast %471 : vector<8x32xf32> to vector<8x1x32xf32>
    tpu.vector_store %arg6[%c0_156, %c6, %c0_157], %479 {strides = array<i32>} : memref<8x8x32xf32, #tpu.memory_space<vmem>>, vector<8x1x32xf32>,
    %c56_158 = arith.constant 56 : index
    %c0_159 = arith.constant 0 : index
    %480 = vector.load %arg10[%c56_158, %c0_159] : memref<64x128xf32, #tpu.memory_space<vmem>>, vector<8x128xf32>
    %cst_160 = arith.constant dense<0.000000e+00> : vector<8x128xf32>
    %481 = tpu.matmul %473, %260, %cst_160 {dimension_numbers = #tpu.dot_dimension_numbers<[1], [0], [0], [1], [0, 0, 1, 1], [], []>} : vector<8x32xf32>, vector<32x128xf32>, vector<8x128xf32> -> vector<8x128xf32>
    %482 = arith.addf %480, %481 : vector<8x128xf32>
    %483 = vector.extract_strided_slice %482 {offsets = [0, 0], sizes = [8, 96], strides = [1, 1]} : vector<8x128xf32> to vector<8x96xf32>
    %484 = arith.negf %483 : vector<8x96xf32>
    %485 = math.exp %484 : vector<8x96xf32>
    %cst_161 = arith.constant 1.000000e+00 : f32
    %486 = vector.broadcast %cst_161 : f32 to vector<8x96xf32>
    %487 = arith.addf %486, %485 : vector<8x96xf32>
    %488 = arith.divf %486, %487 : vector<8x96xf32>
    %489 = vector.extract_strided_slice %488 {offsets = [0, 0], sizes = [8, 32], strides = [1, 1]} : vector<8x96xf32> to vector<8x32xf32>
    %490 = vector.extract_strided_slice %488 {offsets = [0, 32], sizes = [8, 32], strides = [1, 1]} : vector<8x96xf32> to vector<8x32xf32>
    %491 = vector.extract_strided_slice %488 {offsets = [0, 64], sizes = [8, 32], strides = [1, 1]} : vector<8x96xf32> to vector<8x32xf32>
    %492 = vector.extract_strided_slice %482 {offsets = [0, 96], sizes = [8, 32], strides = [1, 1]} : vector<8x128xf32> to vector<8x32xf32>
    %493 = math.tanh %492 : vector<8x32xf32>
    %494 = arith.mulf %490, %476 : vector<8x32xf32>
    %495 = arith.mulf %489, %493 : vector<8x32xf32>
    %496 = arith.addf %494, %495 : vector<8x32xf32>
    %497 = math.tanh %496 : vector<8x32xf32>
    %498 = arith.mulf %491, %497 : vector<8x32xf32>
    %c56_162 = arith.constant 56 : index
    %c0_163 = arith.constant 0 : index
    %499 = vector.load %arg5[%c56_162, %c0_163] : memref<64x32xf32, #tpu.memory_space<vmem>>, vector<8x32xf32>
    %cst_164 = arith.constant 1.000000e+00 : f32
    %500 = vector.broadcast %cst_164 : f32 to vector<8x32xf32>
    %501 = arith.subf %500, %499 : vector<8x32xf32>
    %502 = arith.mulf %499, %498 : vector<8x32xf32>
    %503 = arith.mulf %501, %473 : vector<8x32xf32>
    %504 = arith.addf %502, %503 : vector<8x32xf32>
    %505 = arith.mulf %499, %496 : vector<8x32xf32>
    %506 = arith.mulf %501, %476 : vector<8x32xf32>
    %507 = arith.addf %505, %506 : vector<8x32xf32>
    %c0_165 = arith.constant 0 : index
    %c7 = arith.constant 7 : index
    %c0_166 = arith.constant 0 : index
    %508 = vector.load %arg6[%c0_165, %c7, %c0_166] : memref<8x8x32xf32, #tpu.memory_space<vmem>>, vector<8x1x32xf32>
    %509 = vector.shape_cast %508 : vector<8x1x32xf32> to vector<8x32xf32>
    %510 = vector.shape_cast %502 : vector<8x32xf32> to vector<8x1x32xf32>
    tpu.vector_store %arg6[%c0_165, %c7, %c0_166], %510 {strides = array<i32>} : memref<8x8x32xf32, #tpu.memory_space<vmem>>, vector<8x1x32xf32>,
    %cst_167 = arith.constant -5.000000e-01 : f32
    %cst_168 = arith.constant 5.000000e-01 : f32
    %511 = vector.broadcast %cst_167 : f32 to vector<8x32xf32>
    %512 = arith.maximumf %511, %504 : vector<8x32xf32>
    %513 = vector.broadcast %cst_168 : f32 to vector<8x32xf32>
    %514 = arith.minimumf %513, %512 : vector<8x32xf32>
    %c1_169 = arith.constant 1 : index
    %c0_170 = arith.constant 0 : index
    %c0_171 = arith.constant 0 : index
    %515 = vector.load %arg7[%c1_169, %c0_170, %c0_171] : memref<2x8x32xf32, #tpu.memory_space<vmem>>, vector<1x8x32xf32>
    %516 = vector.shape_cast %515 : vector<1x8x32xf32> to vector<8x32xf32>
    %517 = vector.shape_cast %514 : vector<8x32xf32> to vector<1x8x32xf32>
    tpu.vector_store %arg7[%c1_169, %c0_170, %c0_171], %517 {strides = array<i32>} : memref<2x8x32xf32, #tpu.memory_space<vmem>>, vector<1x8x32xf32>,
    %cst_172 = arith.constant -5.000000e-01 : f32
    %cst_173 = arith.constant 5.000000e-01 : f32
    %518 = vector.broadcast %cst_172 : f32 to vector<8x32xf32>
    %519 = arith.maximumf %518, %507 : vector<8x32xf32>
    %520 = vector.broadcast %cst_173 : f32 to vector<8x32xf32>
    %521 = arith.minimumf %520, %519 : vector<8x32xf32>
    %c1_174 = arith.constant 1 : index
    %c0_175 = arith.constant 0 : index
    %c0_176 = arith.constant 0 : index
    %522 = vector.load %arg8[%c1_174, %c0_175, %c0_176] : memref<2x8x32xf32, #tpu.memory_space<vmem>>, vector<1x8x32xf32>
    %523 = vector.shape_cast %522 : vector<1x8x32xf32> to vector<8x32xf32>
    %524 = vector.shape_cast %521 : vector<8x32xf32> to vector<1x8x32xf32>
    tpu.vector_store %arg8[%c1_174, %c0_175, %c0_176], %524 {strides = array<i32>} : memref<2x8x32xf32, #tpu.memory_space<vmem>>, vector<1x8x32xf32>,
    return
  }
  func.func @transform_0(%arg0: i32) -> (i32, i32) {
    %c0_i32 = arith.constant 0 : i32
    %c0_i32_0 = arith.constant 0 : i32
    %c0_i32_1 = arith.constant 0 : i32
    return %c0_i32, %c0_i32_0 : i32, i32
  }
  func.func @transform_1(%arg0: i32) -> (i32, i32, i32) {
    %c0_i32 = arith.constant 0 : i32
    %c0_i32_0 = arith.constant 0 : i32
    %c0_i32_1 = arith.constant 0 : i32
    %c0_i32_2 = arith.constant 0 : i32
    return %c0_i32, %c0_i32_0, %c0_i32_1 : i32, i32, i32
  }
  func.func @transform_2(%arg0: i32) -> (i32, i32, i32) {
    %c0_i32 = arith.constant 0 : i32
    %c0_i32_0 = arith.constant 0 : i32
    %c0_i32_1 = arith.constant 0 : i32
    %c0_i32_2 = arith.constant 0 : i32
    return %c0_i32, %c0_i32_0, %c0_i32_1 : i32, i32, i32
  }
  func.func @transform_3(%arg0: i32) -> (i32, i32, i32) {
    %c0_i32 = arith.constant 0 : i32
    %c0_i32_0 = arith.constant 0 : i32
    %c0_i32_1 = arith.constant 0 : i32
    %c0_i32_2 = arith.constant 0 : i32
    return %c0_i32, %c0_i32_0, %c0_i32_1 : i32, i32, i32
  }
  func.func @transform_4(%arg0: i32) -> (i32, i32) {
    %c0_i32 = arith.constant 0 : i32
    %c0_i32_0 = arith.constant 0 : i32
    %c0_i32_1 = arith.constant 0 : i32
    return %c0_i32, %c0_i32_0 : i32, i32
  }
  func.func @transform_5(%arg0: i32) -> (i32, i32, i32) {
    %c0_i32 = arith.constant 0 : i32
    %c0_i32_0 = arith.constant 0 : i32
    %c0_i32_1 = arith.constant 0 : i32
    %c0_i32_2 = arith.constant 0 : i32
    return %c0_i32, %c0_i32_0, %c0_i32_1 : i32, i32, i32
  }
  func.func @transform_6(%arg0: i32) -> (i32, i32, i32) {
    %c0_i32 = arith.constant 0 : i32
    %c0_i32_0 = arith.constant 0 : i32
    %c0_i32_1 = arith.constant 0 : i32
    %c0_i32_2 = arith.constant 0 : i32
    return %c0_i32, %c0_i32_0, %c0_i32_1 : i32, i32, i32
  }
  func.func @transform_7(%arg0: i32) -> (i32, i32, i32) {
    %c0_i32 = arith.constant 0 : i32
    %c0_i32_0 = arith.constant 0 : i32
    %c0_i32_1 = arith.constant 0 : i32
    %c0_i32_2 = arith.constant 0 : i32
    return %c0_i32, %c0_i32_0, %c0_i32_1 : i32, i32, i32
  }
}

</mosaic_0001>

<bundles_post_ra>
// kernel: encoder_forward.1
= control target key start
LH: loop header
LB: loop body
LE: loop exit
PB: predicated region body
PF: predicated region fallthrough
CT: control target
= control target key end

     0   :  { %v1829_v4 = vmov 0.0   ;;  %s1830_s11 = smov 32   ;;  %s1831_s12 = smov 96   ;;  %vm28_vm4 = vcmask 261120   ;;  %s2633_s2 = inlined_call_operand.vmem [shape: f32[2,32,128], index: 2, kind: input, shape index: {}]   ;;  %s2634_s0 = inlined_call_operand.vmem [shape: f32[64,128], index: 0, kind: input, shape index: {}]   ;;  %s2635_s4 = inlined_call_operand.vmem [shape: f32[64,32], index: 4, kind: input, shape index: {}]   ;;  %s2636_s1 = inlined_call_operand.vmem [shape: f32[1,32,128], index: 1, kind: input, shape index: {}]   ;;  %s2637_s3 = inlined_call_operand.vmem [shape: f32[1,1,128], index: 3, kind: input, shape index: {}]   ;;  %s2638_s5 = inlined_call_operand.vmem [shape: f32[8,8,32], index: 5, kind: output, shape index: {0}]   ;;  %s2639_s6 = inlined_call_operand.vmem [shape: f32[2,8,32], index: 6, kind: output, shape index: {1}]   ;;  %s2640_s7 = inlined_call_operand.vmem [shape: f32[2,8,32], index: 7, kind: output, shape index: {2}]  }
   0x1   :  { %v1876_v0 = vld [vmem:[%s2633_s2 + $0x18] sm:$0xff]  ;;  %v1881_v1 = vld [vmem:[%s2633_s2 + $0x10] sm:$0xff]  ;;  %v1888_v2 = vld [vmem:[%s2633_s2 + $0x8] sm:$0xff]  ;;  %s1832_s15 = smov 64  }
   0x2   :  { %44 = vmatpush.msra.mxu0 %v1876_v0  ;;  %122 = vmatpush.msra.mxu1 %v1876_v0  ;;  %v1896_v3 = vld [vmem:[%s2633_s2] sm:$0xff]  ;;  %v106_v39 = vld [vmem:[%s2634_s0 + $0x8] sm:$0xff] }
   0x3   :  { %205 = vmatpush.msra.mxu2 %v1876_v0  ;;  %v27_v5 = vld [vmem:[%s2634_s0] sm:$0xff] }
   0x4   :  { %45 = vmatpush.msra.mxu0 %v1881_v1  ;;  %123 = vmatpush.msra.mxu1 %v1881_v1  ;;  %v1928_v28 = vld [vmem:[%s2635_s4] sm:$0xff] }
   0x5   :  { %206 = vmatpush.msra.mxu2 %v1881_v1  ;;  %v91_v29 = vsub.f32 1.0, %v1928_v28 }
   0x6   :  { %46 = vmatpush.msra.mxu0 %v1888_v2  ;;  %124 = vmatpush.msra.mxu1 %v1888_v2 }
   0x7   :  { %207 = vmatpush.msra.mxu2 %v1888_v2  ;;  %v1931_v30 = vmul.f32 0.0, %v91_v29 }
   0x8   :  { %47 = vmatpush.msra.mxu0 %v1896_v3  ;;  %125 = vmatpush.msra.mxu1 %v1896_v3 }
   0x9   :  { %48 = vmatmul.f32.vlgmr.msra.gmra.mxu0 %v1829_v4  ;;  %208 = vmatpush.msra.mxu2 %v1896_v3 }
   0xa   :  { %288 = vmatpush.msrb.mxu1 %v1876_v0  ;;  %371 = vmatpush.msrb.mxu0 %v1876_v0 }
   0xb   :  { %537 = vmatpush.msrb.mxu2 %v1876_v0 }
   0xc   :  { %289 = vmatpush.msrb.mxu1 %v1881_v1  ;;  %372 = vmatpush.msrb.mxu0 %v1881_v1 }
   0xd   :  { %538 = vmatpush.msrb.mxu2 %v1881_v1 }
   0xe   :  { %290 = vmatpush.msrb.mxu1 %v1888_v2  ;;  %373 = vmatpush.msrb.mxu0 %v1888_v2 }
   0xf   :  { %539 = vmatpush.msrb.mxu2 %v1888_v2 }
  0x10   :  { %291 = vmatpush.msrb.mxu1 %v1896_v3  ;;  %374 = vmatpush.msrb.mxu0 %v1896_v3 }
  0x11   :  { %540 = vmatpush.msrb.mxu2 %v1896_v3 }
  0x86   :  { %v49_v6 = vpop.f32.mrf.mxu0 }
  0x87   :  { %v52_v7 = vadd.f32 %v49_v6, %v27_v5  ;;  %v1956_v6 = vld [vmem:[%s2635_s4 + $0x8] sm:$0xff] }
  0x89   :  { %1697 = vtanh.f32 %v52_v7  ;;  %v1640_v9 = vmul.f32 -1.442695, %v52_v7  ;;  %v1959_v7 = vsub.f32 1.0, %v1956_v6 }
  0x8b   :  { %1699 = vpow2.f32 %v1640_v9 }
  0x8f   :  { %v1698_v8 = vpop.eup %1697 }
  0x90   :  { %75 = vrot.lane.b32.xlu0 %v1698_v8, %s1830_s11 }
  0x91   :  { %v1700_v10 = vpop.eup %1699 }
  0x92   :  { %v56_v11 = vadd.f32 1.0, %v1700_v10 }
  0x94   :  { %1701 = vrcp.f32 %v56_v11  ;;  %v68_v17 = vand.u32 2147483648, %v56_v11  ;;  %vm62_vm1 = vweird.f32 %v56_v11  ;;  %v66_v18 = vand.u32 2147483647, %v56_v11 }
  0x96   :  { %v69_v20 = vor.u32 1.1754944e-38, %v68_v17  ;;  %vm67_vm3 = vcmp.eq.f32.partialorder %v66_v18, 8.507059e+37 }
  0x9a   :  { %v1702_v12 = vpop.eup %1701 }
  0x9b   :  { %v58_v13 = vmul.f32 %v1702_v12, %v56_v11  ;;  %vm63_vm0 = vweird.f32 %v1702_v12 }
  0x9c   :  { %vm64_vm2 = vmor %vm62_vm1, %vm63_vm0 }
  0x9d   :  { %v59_v14 = vsub.f32 1.0, %v58_v13 }
  0x9f   :  { %v60_v15 = vmul.f32 %v1702_v12, %v59_v14 }
  0xa1   :  { %v61_v16 = vadd.f32 %v1702_v12, %v60_v15 }
  0xa3   :  { %v65_v19 = vsel %vm64_vm2, %v1702_v12, %v61_v16  ;;  %v189_v16 = vld [vmem:[%s2634_s0 + $0x10] sm:$0xff] }
  0xa4   :  { %v70_v22 = vsel %vm67_vm3, %v69_v20, %v65_v19 }
  0xa5   :  { %v73_v24 = vmul.f32 0.0, %v70_v22 }
 0x102   :  { %v76_v21 = vpop.permute.xlu0 %75 }
 0x103   :  { %v78_v23 = vmul.f32 %v76_v21, %v70_v22 }
 0x105   :  { %80 = vrot.lane.b32.xlu0 %v78_v23, %s1830_s11 }
 0x177   :  { %v81_v25 = vpop.permute.xlu0 %80 }
 0x178   :  { %v83_v26 = vadd.f32 %v81_v25, %v73_v24 }
 0x17a   :  { %1703 = vtanh.f32 %v83_v26  ;;  %100 = vrot.lane.b32.xlu2 %v83_v26, %s1831_s12 }
 0x180   :  { %v1704_v27 = vpop.eup %1703 }
 0x181   :  { %86 = vrot.lane.b32.xlu1 %v1704_v27, %s1830_s11 }
 0x1d4   :  { %v101_v31 = vpop.permute.xlu2 %100 }
 0x1d5   :  { %v103_v32 = vmul.f32 %v101_v31, %v1928_v28 }
 0x1d7   :  { %v104_v33 = vadd.f32 %v103_v32, %v1931_v30 }
 0x1d9   :  { %152 = vrot.lane.b32.xlu0 %v104_v33, %s1830_s11  ;;  %v186_v9 = vmul.f32 %v1959_v7, %v104_v33 }
 0x1f3   :  { %v87_v34 = vpop.permute.xlu1 %86 }
 0x1f4   :  { %v89_v35 = vmul.f32 %v87_v34, %v70_v22 }
 0x1f6   :  { %93 = vrot.lane.b32.xlu1 %v89_v35, %s1832_s15 }
 0x24b   :  { %v153_v58 = vpop.permute.xlu0 %152 }
 0x268   :  { %v94_v36 = vpop.permute.xlu1 %93 }
 0x269   :  { %v96_v37 = vmul.f32 %v94_v36, %v1928_v28 }
 0x26b   :  { %v98_v38 = vadd.f32 %v1931_v30, %v96_v37  ;;  %105 = vst.msk [vmem:[#allocation2] sm:$0xff] %vm28_vm4, %v96_v37 }
 0x26d   :  { %1641 = vmatmul.msk.f32.vlgmr.msra.gmra.mxu1 %vm28_vm4, %v98_v38  ;;  %v179_v13 = vmul.f32 %v1959_v7, %v98_v38 }
 0x26e   :  { %454 = vmatpush.msra.mxu1 %v1876_v0 }
 0x270   :  { %455 = vmatpush.msra.mxu1 %v1881_v1 }
 0x272   :  { %456 = vmatpush.msra.mxu1 %v1888_v2 }
 0x274   :  { %457 = vmatpush.msra.mxu1 %v1896_v3 }
 0x2ea   :  { %v127_v40 = vpop.f32.mrf.mxu1 }
 0x2eb   :  { %v130_v41 = vadd.f32 %v127_v40, %v106_v39  ;;  %v255_v40 = vld [vmem:[%s2635_s4 + $0x10] sm:$0xff] }
 0x2ed   :  { %1705 = vtanh.f32 %v130_v41  ;;  %v1642_v43 = vmul.f32 -1.442695, %v130_v41  ;;  %v1983_v41 = vsub.f32 1.0, %v255_v40 }
 0x2ef   :  { %1707 = vpow2.f32 %v1642_v43 }
 0x2f3   :  { %v1706_v42 = vpop.eup %1705 }
 0x2f4   :  { %157 = vrot.lane.b32.xlu2 %v1706_v42, %s1830_s11 }
 0x2f5   :  { %v1708_v44 = vpop.eup %1707 }
 0x2f6   :  { %v134_v45 = vadd.f32 1.0, %v1708_v44 }
 0x2f8   :  { %1709 = vrcp.f32 %v134_v45  ;;  %v146_v51 = vand.u32 2147483648, %v134_v45  ;;  %vm140_vm6 = vweird.f32 %v134_v45  ;;  %v144_v52 = vand.u32 2147483647, %v134_v45 }
 0x2fa   :  { %v147_v54 = vor.u32 1.1754944e-38, %v146_v51  ;;  %vm145_vm8 = vcmp.eq.f32.partialorder %v144_v52, 8.507059e+37 }
 0x2fe   :  { %v1710_v46 = vpop.eup %1709 }
 0x2ff   :  { %v136_v47 = vmul.f32 %v1710_v46, %v134_v45  ;;  %vm141_vm5 = vweird.f32 %v1710_v46 }
 0x300   :  { %vm142_vm7 = vmor %vm140_vm6, %vm141_vm5 }
 0x301   :  { %v137_v48 = vsub.f32 1.0, %v136_v47 }
 0x303   :  { %v138_v49 = vmul.f32 %v1710_v46, %v137_v48 }
 0x305   :  { %v139_v50 = vadd.f32 %v1710_v46, %v138_v49 }
 0x307   :  { %v143_v53 = vsel %vm142_vm7, %v1710_v46, %v139_v50  ;;  %v272_v50 = vld [vmem:[%s2634_s0 + $0x18] sm:$0xff] }
 0x308   :  { %v148_v56 = vsel %vm145_vm8, %v147_v54, %v143_v53 }
 0x309   :  { %v155_v59 = vmul.f32 %v153_v58, %v148_v56 }
 0x34e   :  { %v158_v55 = vpop.permute.xlu2 %157 }
 0x34f   :  { %v160_v57 = vmul.f32 %v158_v55, %v148_v56 }
 0x351   :  { %162 = vrot.lane.b32.xlu1 %v160_v57, %s1830_s11 }
 0x3c3   :  { %v163_v60 = vpop.permute.xlu1 %162 }
 0x3c4   :  { %v165_v61 = vadd.f32 %v163_v60, %v155_v59 }
 0x3c6   :  { %1711 = vtanh.f32 %v165_v61  ;;  %182 = vrot.lane.b32.xlu1 %v165_v61, %s1831_s12 }
 0x3cc   :  { %v1712_v62 = vpop.eup %1711 }
 0x3cd   :  { %168 = vrot.lane.b32.xlu2 %v1712_v62, %s1830_s11 }
 0x427   :  { %v169_v63 = vpop.permute.xlu2 %168 }
 0x428   :  { %v171_v5 = vmul.f32 %v169_v63, %v148_v56 }
 0x42a   :  { %175 = vrot.lane.b32.xlu0 %v171_v5, %s1832_s15 }
 0x438   :  { %v183_v8 = vpop.permute.xlu1 %182 }
 0x439   :  { %v185_v10 = vmul.f32 %v183_v8, %v1956_v6 }
 0x43b   :  { %v187_v11 = vadd.f32 %v186_v9, %v185_v10 }
 0x43d   :  { %235 = vrot.lane.b32.xlu0 %v187_v11, %s1830_s11  ;;  %v269_v43 = vmul.f32 %v1983_v41, %v187_v11 }
 0x49c   :  { %v176_v12 = vpop.permute.xlu0 %175 }
 0x49d   :  { %v178_v14 = vmul.f32 %v176_v12, %v1956_v6 }
 0x49f   :  { %v180_v15 = vadd.f32 %v179_v13, %v178_v14  ;;  %188 = vst.msk [vmem:[#allocation2 + $0x8] sm:$0xff] %vm28_vm4, %v178_v14 }
 0x4a1   :  { %1643 = vmatmul.msk.f32.vlgmr.msra.gmra.mxu2 %vm28_vm4, %v180_v15  ;;  %v262_v47 = vmul.f32 %v1983_v41, %v180_v15 }
 0x4a2   :  { %620 = vmatpush.msra.mxu2 %v1876_v0 }
 0x4a4   :  { %621 = vmatpush.msra.mxu2 %v1881_v1 }
 0x4a6   :  { %622 = vmatpush.msra.mxu2 %v1888_v2 }
 0x4a8   :  { %623 = vmatpush.msra.mxu2 %v1896_v3 }
 0x4af   :  { %v236_v33 = vpop.permute.xlu0 %235 }
 0x524   :  { %v210_v17 = vpop.f32.mrf.mxu2 }
 0x525   :  { %v213_v18 = vadd.f32 %v210_v17, %v189_v16 }
 0x527   :  { %1713 = vtanh.f32 %v213_v18  ;;  %v1644_v20 = vmul.f32 -1.442695, %v213_v18 }
 0x529   :  { %1715 = vpow2.f32 %v1644_v20 }
 0x52d   :  { %v1714_v19 = vpop.eup %1713 }
 0x52e   :  { %240 = vrot.lane.b32.xlu2 %v1714_v19, %s1830_s11  ;;  %v338_v19 = vld [vmem:[%s2635_s4 + $0x18] sm:$0xff] }
 0x52f   :  { %v1716_v21 = vpop.eup %1715  ;;  %v2004_v20 = vsub.f32 1.0, %v338_v19 }
 0x530   :  { %v217_v0 = vadd.f32 1.0, %v1716_v21 }
 0x532   :  { %1717 = vrcp.f32 %v217_v0  ;;  %v229_v24 = vand.u32 2147483648, %v217_v0  ;;  %vm223_vm10 = vweird.f32 %v217_v0  ;;  %v227_v25 = vand.u32 2147483647, %v217_v0 }
 0x534   :  { %v230_v27 = vor.u32 1.1754944e-38, %v229_v24  ;;  %vm228_vm12 = vcmp.eq.f32.partialorder %v227_v25, 8.507059e+37  ;;  %v701_v24 = vld [vmem:[%s2636_s1] sm:$0xff] }
 0x538   :  { %v1718_v1 = vpop.eup %1717 }
 0x539   :  { %v219_v22 = vmul.f32 %v1718_v1, %v217_v0  ;;  %vm224_vm9 = vweird.f32 %v1718_v1 }
 0x53a   :  { %vm225_vm11 = vmor %vm223_vm10, %vm224_vm9 }
 0x53b   :  { %v220_v2 = vsub.f32 1.0, %v219_v22 }
 0x53d   :  { %v221_v23 = vmul.f32 %v1718_v1, %v220_v2  ;;  %v704_v2 = vld [vmem:[%s2636_s1 + $0x18] sm:$0xff] }
 0x53e   :  { %745 = vmatpush.msra.mxu0 %v704_v2  ;;  %1688 = vmatpush.msra.mxu3 %v704_v2 }
 0x53f   :  { %v222_v3 = vadd.f32 %v1718_v1, %v221_v23  ;;  %v703_v23 = vld [vmem:[%s2636_s1 + $0x10] sm:$0xff] }
 0x540   :  { %746 = vmatpush.msra.mxu0 %v703_v23  ;;  %1689 = vmatpush.msra.mxu3 %v703_v23 }
 0x541   :  { %v226_v26 = vsel %vm225_vm11, %v1718_v1, %v222_v3  ;;  %v702_v3 = vld [vmem:[%s2636_s1 + $0x8] sm:$0xff] }
 0x542   :  { %v231_v31 = vsel %vm228_vm12, %v230_v27, %v226_v26  ;;  %747 = vmatpush.msra.mxu0 %v702_v3  ;;  %1690 = vmatpush.msra.mxu3 %v702_v3 }
 0x543   :  { %v238_v34 = vmul.f32 %v236_v33, %v231_v31 }
 0x544   :  { %748 = vmatpush.msra.mxu0 %v701_v24  ;;  %1691 = vmatpush.msra.mxu3 %v701_v24 }
 0x588   :  { %v241_v29 = vpop.permute.xlu2 %240 }
 0x589   :  { %v243_v32 = vmul.f32 %v241_v29, %v231_v31 }
 0x58b   :  { %245 = vrot.lane.b32.xlu1 %v243_v32, %s1830_s11  ;;  %v694_v32 = vld [vmem:[#allocation2 + $0x8] sm:$0xff] }
 0x5fd   :  { %v246_v35 = vpop.permute.xlu1 %245 }
 0x5fe   :  { %v248_v36 = vadd.f32 %v246_v35, %v238_v34  ;;  %v355_v35 = vld [vmem:[%s2634_s0 + $0x20] sm:$0xff] }
 0x600   :  { %1719 = vtanh.f32 %v248_v36  ;;  %265 = vrot.lane.b32.xlu1 %v248_v36, %s1831_s12 }
 0x606   :  { %v1720_v37 = vpop.eup %1719 }
 0x607   :  { %251 = vrot.lane.b32.xlu2 %v1720_v37, %s1830_s11 }
 0x661   :  { %v252_v38 = vpop.permute.xlu2 %251 }
 0x662   :  { %v254_v39 = vmul.f32 %v252_v38, %v231_v31  ;;  %v693_v31 = vld [vmem:[#allocation2] sm:$0xff] }
 0x664   :  { %258 = vrot.lane.b32.xlu0 %v254_v39, %s1832_s15 }
 0x672   :  { %v266_v42 = vpop.permute.xlu1 %265 }
 0x673   :  { %v268_v44 = vmul.f32 %v266_v42, %v255_v40 }
 0x675   :  { %v270_v45 = vadd.f32 %v269_v43, %v268_v44 }
 0x677   :  { %318 = vrot.lane.b32.xlu0 %v270_v45, %s1830_s11  ;;  %v352_v0 = vmul.f32 %v2004_v20, %v270_v45 }
 0x6d6   :  { %v259_v46 = vpop.permute.xlu0 %258 }
 0x6d7   :  { %v261_v48 = vmul.f32 %v259_v46, %v255_v40 }
 0x6d9   :  { %v1988_v49 = vadd.f32 %v262_v47, %v261_v48  ;;  %271 = vst.msk [vmem:[#allocation2 + $0x10] sm:$0xff] %vm28_vm4, %v261_v48 }
 0x6db   :  { %1645 = vmatmul.msk.f32.vlgmr.msrb.gmra.mxu1 %vm28_vm4, %v1988_v49  ;;  %v345_v26 = vmul.f32 %v2004_v20, %v1988_v49 }
 0x6e0   :  { %v695_v33 = vld [vmem:[#allocation2 + $0x10] sm:$0xff] }
 0x6e9   :  { %v319_v12 = vpop.permute.xlu0 %318 }
 0x758   :  { %v293_v51 = vpop.f32.mrf.mxu1 }
 0x759   :  { %v296_v52 = vadd.f32 %v293_v51, %v272_v50 }
 0x75b   :  { %1721 = vtanh.f32 %v296_v52  ;;  %v1646_v54 = vmul.f32 -1.442695, %v296_v52 }
 0x75d   :  { %1723 = vpow2.f32 %v1646_v54 }
 0x761   :  { %v1722_v53 = vpop.eup %1721 }
 0x762   :  { %323 = vrot.lane.b32.xlu2 %v1722_v53, %s1830_s11 }
 0x763   :  { %v1724_v55 = vpop.eup %1723 }
 0x764   :  { %v300_v56 = vadd.f32 1.0, %v1724_v55 }
 0x766   :  { %1725 = vrcp.f32 %v300_v56  ;;  %v312_v62 = vand.u32 2147483648, %v300_v56  ;;  %vm306_vm14 = vweird.f32 %v300_v56  ;;  %v310_v63 = vand.u32 2147483647, %v300_v56 }
 0x768   :  { %v313_v8 = vor.u32 1.1754944e-38, %v312_v62  ;;  %vm311_vm0 = vcmp.eq.f32.partialorder %v310_v63, 8.507059e+37  ;;  %v421_v62 = vld [vmem:[%s2635_s4 + $0x20] sm:$0xff] }
 0x769   :  { %v2045_v63 = vsub.f32 1.0, %v421_v62 }
 0x76c   :  { %v1726_v57 = vpop.eup %1725 }
 0x76d   :  { %v302_v58 = vmul.f32 %v1726_v57, %v300_v56  ;;  %vm307_vm13 = vweird.f32 %v1726_v57 }
 0x76e   :  { %vm308_vm15 = vmor %vm306_vm14, %vm307_vm13 }
 0x76f   :  { %v303_v59 = vsub.f32 1.0, %v302_v58 }
 0x771   :  { %v304_v60 = vmul.f32 %v1726_v57, %v303_v59 }
 0x773   :  { %v305_v61 = vadd.f32 %v1726_v57, %v304_v60 }
 0x775   :  { %v309_v5 = vsel %vm308_vm15, %v1726_v57, %v305_v61 }
 0x776   :  { %v314_v10 = vsel %vm311_vm0, %v313_v8, %v309_v5 }
 0x777   :  { %v321_v13 = vmul.f32 %v319_v12, %v314_v10  ;;  %v2061_v12 = vld [vmem:[%s2633_s2 + $0x30] sm:$0xff] }
 0x7bc   :  { %v324_v9 = vpop.permute.xlu2 %323 }
 0x7bd   :  { %v326_v11 = vmul.f32 %v324_v9, %v314_v10 }
 0x7bf   :  { %328 = vrot.lane.b32.xlu1 %v326_v11, %s1830_s11  ;;  %v2056_v11 = vld [vmem:[%s2633_s2 + $0x38] sm:$0xff] }
 0x7c0   :  { %800 = vmatpush.msrb.mxu1 %v2056_v11  ;;  %1006 = vmatpush.msrb.mxu3 %v2056_v11 }
 0x7c2   :  { %801 = vmatpush.msrb.mxu1 %v2061_v12  ;;  %1007 = vmatpush.msrb.mxu3 %v2061_v12 }
 0x831   :  { %v329_v14 = vpop.permute.xlu1 %328 }
 0x832   :  { %v331_v15 = vadd.f32 %v329_v14, %v321_v13  ;;  %v2068_v13 = vld [vmem:[%s2633_s2 + $0x28] sm:$0xff]  ;;  %v2077_v14 = vld [vmem:[%s2633_s2 + $0x20] sm:$0xff] }
 0x833   :  { %802 = vmatpush.msrb.mxu1 %v2068_v13  ;;  %1008 = vmatpush.msrb.mxu3 %v2068_v13 }
 0x834   :  { %1727 = vtanh.f32 %v331_v15  ;;  %348 = vrot.lane.b32.xlu1 %v331_v15, %s1831_s12 }
 0x835   :  { %803 = vmatpush.msrb.mxu1 %v2077_v14  ;;  %1009 = vmatpush.msrb.mxu3 %v2077_v14 }
 0x83a   :  { %v1728_v16 = vpop.eup %1727 }
 0x83b   :  { %334 = vrot.lane.b32.xlu2 %v1728_v16, %s1830_s11 }
 0x895   :  { %v335_v17 = vpop.permute.xlu2 %334 }
 0x896   :  { %v337_v18 = vmul.f32 %v335_v17, %v314_v10 }
 0x898   :  { %341 = vrot.lane.b32.xlu0 %v337_v18, %s1832_s15 }
 0x8a6   :  { %v349_v21 = vpop.permute.xlu1 %348 }
 0x8a7   :  { %v351_v1 = vmul.f32 %v349_v21, %v338_v19  ;;  %v438_v21 = vld [vmem:[%s2634_s0 + $0x28] sm:$0xff] }
 0x8a9   :  { %v2007_v22 = vadd.f32 %v352_v0, %v351_v1 }
 0x8ab   :  { %401 = vrot.lane.b32.xlu0 %v2007_v22, %s1830_s11  ;;  %v435_v8 = vmul.f32 %v2045_v63, %v2007_v22 }
 0x90a   :  { %v342_v25 = vpop.permute.xlu0 %341 }
 0x90b   :  { %v344_v27 = vmul.f32 %v342_v25, %v338_v19 }
 0x90d   :  { %v2025_v29 = vadd.f32 %v345_v26, %v344_v27  ;;  %354 = vst.msk [vmem:[#allocation2 + $0x18] sm:$0xff] %vm28_vm4, %v344_v27 }
 0x90f   :  { %1647 = vmatmul.msk.f32.vlgmr.msrb.gmra.mxu0 %vm28_vm4, %v2025_v29  ;;  %v428_v16 = vmul.f32 %v2045_v63, %v2025_v29 }
 0x914   :  { %v696_v34 = vld [vmem:[#allocation2 + $0x18] sm:$0xff] }
 0x917   :  { %1657 = vmatmul.msk.f32.vlgmr.msra.gmra.mxu0 %vm28_vm4, %v693_v31 }
 0x91d   :  { %v402_v55 = vpop.permute.xlu0 %401 }
 0x91f   :  { %1658 = vmatmul.msk.f32.gmra.mxu0 %vm28_vm4, %v694_v32 }
 0x927   :  { %1659 = vmatmul.msk.f32.gmra.mxu0 %vm28_vm4, %v695_v33 }
 0x92f   :  { %1660 = vmatmul.msk.f32.gmra.mxu0 %vm28_vm4, %v696_v34 }
 0x98c   :  { %v376_v36 = vpop.f32.mrf.mxu0 }
 0x98d   :  { %v379_v37 = vadd.f32 %v376_v36, %v355_v35 }
 0x98f   :  { %1729 = vtanh.f32 %v379_v37  ;;  %v1648_v39 = vmul.f32 -1.442695, %v379_v37 }
 0x991   :  { %1731 = vpow2.f32 %v1648_v39 }
 0x995   :  { %v1730_v38 = vpop.eup %1729 }
 0x996   :  { %406 = vrot.lane.b32.xlu2 %v1730_v38, %s1830_s11 }
 0x997   :  { %v1732_v40 = vpop.eup %1731 }
 0x998   :  { %v383_v42 = vadd.f32 1.0, %v1732_v40 }
 0x99a   :  { %1733 = vrcp.f32 %v383_v42  ;;  %v395_v48 = vand.u32 2147483648, %v383_v42  ;;  %vm389_vm2 = vweird.f32 %v383_v42  ;;  %v393_v49 = vand.u32 2147483647, %v383_v42 }
 0x99c   :  { %v396_v51 = vor.u32 1.1754944e-38, %v395_v48  ;;  %vm394_vm5 = vcmp.eq.f32.partialorder %v393_v49, 8.507059e+37 }
 0x9a0   :  { %v1734_v43 = vpop.eup %1733 }
 0x9a1   :  { %v385_v44 = vmul.f32 %v1734_v43, %v383_v42  ;;  %vm390_vm1 = vweird.f32 %v1734_v43 }
 0x9a2   :  { %vm391_vm3 = vmor %vm389_vm2, %vm390_vm1  ;;  %vm876_vm2 = vcmask 253952  }
 0x9a3   :  { %v386_v45 = vsub.f32 1.0, %v385_v44  ;;  %v750_v44 = vpop.f32.mrf.mxu0 }
 0x9a5   :  { %v387_v46 = vmul.f32 %v1734_v43, %v386_v45 }
 0x9a7   :  { %v388_v47 = vadd.f32 %v1734_v43, %v387_v46 }
 0x9a9   :  { %v392_v50 = vsel %vm391_vm3, %v1734_v43, %v388_v47  ;;  %v2112_v43 = vld [vmem:[%s2637_s3] ss:$0 sm:$0xff] }
 0x9aa   :  { %v397_v53 = vsel %vm394_vm5, %v396_v51, %v392_v50  ;;  %v751_v46 = vadd.f32 %v2112_v43, %v750_v44  ;;  %v2120_v51 = vld [vmem:[%s2635_s4 + $0x28] sm:$0xff] }
 0x9ab   :  { %v404_v56 = vmul.f32 %v402_v55, %v397_v53 }
 0x9f0   :  { %v407_v52 = vpop.permute.xlu2 %406 }
 0x9f1   :  { %v409_v54 = vmul.f32 %v407_v52, %v397_v53  ;;  %v2123_v52 = vsub.f32 1.0, %v2120_v51 }
 0x9f3   :  { %411 = vrot.lane.b32.xlu1 %v409_v54, %s1830_s11 }
 0xa65   :  { %v412_v57 = vpop.permute.xlu1 %411 }
 0xa66   :  { %v414_v58 = vadd.f32 %v412_v57, %v404_v56 }
 0xa68   :  { %1735 = vtanh.f32 %v414_v58  ;;  %431 = vrot.lane.b32.xlu1 %v414_v58, %s1831_s12 }
 0xa6e   :  { %v1736_v59 = vpop.eup %1735 }
 0xa6f   :  { %417 = vrot.lane.b32.xlu2 %v1736_v59, %s1830_s11 }
 0xac9   :  { %v418_v60 = vpop.permute.xlu2 %417 }
 0xaca   :  { %v420_v61 = vmul.f32 %v418_v60, %v397_v53 }
 0xacc   :  { %424 = vrot.lane.b32.xlu0 %v420_v61, %s1832_s15 }
 0xada   :  { %v432_v5 = vpop.permute.xlu1 %431 }
 0xadb   :  { %v434_v9 = vmul.f32 %v432_v5, %v421_v62 }
 0xadd   :  { %v2049_v10 = vadd.f32 %v435_v8, %v434_v9 }
 0xadf   :  { %484 = vrot.lane.b32.xlu0 %v2049_v10, %s1830_s11  ;;  %v518_v54 = vmul.f32 %v2123_v52, %v2049_v10 }
 0xb3e   :  { %v425_v15 = vpop.permute.xlu0 %424 }
 0xb3f   :  { %v427_v17 = vmul.f32 %v425_v15, %v421_v62 }
 0xb41   :  { %v2083_v18 = vadd.f32 %v428_v16, %v427_v17  ;;  %437 = vst.msk [vmem:[#allocation2 + $0x20] sm:$0xff] %vm28_vm4, %v427_v17 }
 0xb43   :  { %1649 = vmatmul.msk.f32.vlgmr.msra.gmra.mxu1 %vm28_vm4, %v2083_v18  ;;  %v511_v9 = vmul.f32 %v2123_v52, %v2083_v18 }
 0xb44   :  { %1111 = vmatpush.msra.mxu1 %v2056_v11 }
 0xb46   :  { %1112 = vmatpush.msra.mxu1 %v2061_v12 }
 0xb48   :  { %v697_v19 = vld [vmem:[#allocation2 + $0x20] sm:$0xff]  ;;  %1113 = vmatpush.msra.mxu1 %v2068_v13 }
 0xb49   :  { %1661 = vmatmul.msk.f32.vlgmr.msra.gmra.mxu3 %vm28_vm4, %v697_v19 }
 0xb4a   :  { %1114 = vmatpush.msra.mxu1 %v2077_v14  ;;  %1321 = vmatpush.msra.mxu3 %v2056_v11 }
 0xb4b   :  { %804 = vmatmul.f32.vlgmr.msrb.gmra.mxu1 %v1829_v4 }
 0xb4c   :  { %1322 = vmatpush.msra.mxu3 %v2061_v12  ;;  %1426 = vmatpush.msrb.mxu1 %v2056_v11 }
 0xb4e   :  { %1323 = vmatpush.msra.mxu3 %v2068_v13  ;;  %1427 = vmatpush.msrb.mxu1 %v2061_v12 }
 0xb50   :  { %1324 = vmatpush.msra.mxu3 %v2077_v14  ;;  %1428 = vmatpush.msrb.mxu1 %v2068_v13 }
 0xb51   :  { %v485_v37 = vpop.permute.xlu0 %484 }
 0xb52   :  { %1429 = vmatpush.msrb.mxu1 %v2077_v14 }
 0xbc0   :  { %v459_v0 = vpop.f32.mrf.mxu1 }
 0xbc1   :  { %v462_v4 = vadd.f32 %v459_v0, %v438_v21 }
 0xbc3   :  { %1737 = vtanh.f32 %v462_v4  ;;  %v1650_v22 = vmul.f32 -1.442695, %v462_v4 }
 0xbc5   :  { %1739 = vpow2.f32 %v1650_v22 }
 0xbc8   :  { %v805_v45 = vpop.f32.mrf.mxu1 }
 0xbc9   :  { %v1738_v1 = vpop.eup %1737  ;;  %v808_v47 = vadd.f32 %v805_v45, %v751_v46 }
 0xbca   :  { %489 = vrot.lane.b32.xlu2 %v1738_v1, %s1830_s11 }
 0xbcb   :  { %v1740_v2 = vpop.eup %1739  ;;  %v1669_v57 = vmul.f32 -1.442695, %v808_v47 }
 0xbcc   :  { %v466_v23 = vadd.f32 1.0, %v1740_v2  ;;  %v521_v2 = vld [vmem:[%s2634_s0 + $0x30] sm:$0xff] }
 0xbce   :  { %1741 = vrcp.f32 %v466_v23  ;;  %v478_v29 = vand.u32 2147483648, %v466_v23  ;;  %vm472_vm7 = vweird.f32 %v466_v23  ;;  %v476_v31 = vand.u32 2147483647, %v466_v23 }
 0xbd0   :  { %v479_v33 = vor.u32 1.1754944e-38, %v478_v29  ;;  %vm477_vm9 = vcmp.eq.f32.partialorder %v476_v31, 8.507059e+37 }
 0xbd4   :  { %v1742_v3 = vpop.eup %1741 }
 0xbd5   :  { %v468_v24 = vmul.f32 %v1742_v3, %v466_v23  ;;  %vm473_vm6 = vweird.f32 %v1742_v3 }
 0xbd6   :  { %vm474_vm8 = vmor %vm472_vm7, %vm473_vm6 }
 0xbd7   :  { %v469_v25 = vsub.f32 1.0, %v468_v24 }
 0xbd9   :  { %v470_v26 = vmul.f32 %v1742_v3, %v469_v25 }
 0xbdb   :  { %v471_v27 = vadd.f32 %v1742_v3, %v470_v26 }
 0xbdd   :  { %v475_v32 = vsel %vm474_vm8, %v1742_v3, %v471_v27 }
 0xbde   :  { %v480_v35 = vsel %vm477_vm9, %v479_v33, %v475_v32 }
 0xbdf   :  { %v487_v38 = vmul.f32 %v485_v37, %v480_v35 }
 0xc24   :  { %v490_v34 = vpop.permute.xlu2 %489 }
 0xc25   :  { %v492_v36 = vmul.f32 %v490_v34, %v480_v35 }
 0xc27   :  { %494 = vrot.lane.b32.xlu1 %v492_v36, %s1830_s11 }
 0xc99   :  { %v495_v39 = vpop.permute.xlu1 %494 }
 0xc9a   :  { %v497_v40 = vadd.f32 %v495_v39, %v487_v38 }
 0xc9c   :  { %1743 = vtanh.f32 %v497_v40  ;;  %514 = vrot.lane.b32.xlu1 %v497_v40, %s1831_s12 }
 0xc9d   :  { %1745 = vtanh.f32 %v808_v47 }
 0xc9e   :  { %1747 = vpow2.f32 %v1669_v57 }
 0xca2   :  { %v1744_v42 = vpop.eup %1743 }
 0xca3   :  { %500 = vrot.lane.b32.xlu2 %v1744_v42, %s1830_s11  ;;  %v1746_v50 = vpop.eup %1745 }
 0xca4   :  { %v1748_v58 = vpop.eup %1747 }
 0xca5   :  { %v812_v59 = vadd.f32 1.0, %v1748_v58 }
 0xca7   :  { %1749 = vrcp.f32 %v812_v59  ;;  %v824_v16 = vand.u32 2147483648, %v812_v59  ;;  %vm818_vm11 = vweird.f32 %v812_v59  ;;  %v822_v19 = vand.u32 2147483647, %v812_v59 }
 0xca9   :  { %v825_v0 = vor.u32 1.1754944e-38, %v824_v16  ;;  %vm823_vm13 = vcmp.eq.f32.partialorder %v822_v19, 8.507059e+37  ;;  %v2193_v19 = vld [vmem:[%s2635_s4 + $0x30] sm:$0xff] }
 0xcad   :  { %v1750_v60 = vpop.eup %1749 }
 0xcae   :  { %v814_v61 = vmul.f32 %v1750_v60, %v812_v59  ;;  %vm819_vm10 = vweird.f32 %v1750_v60 }
 0xcaf   :  { %vm820_vm12 = vmor %vm818_vm11, %vm819_vm10 }
 0xcb0   :  { %v815_v62 = vsub.f32 1.0, %v814_v61 }
 0xcb2   :  { %v816_v5 = vmul.f32 %v1750_v60, %v815_v62 }
 0xcb4   :  { %v817_v15 = vadd.f32 %v1750_v60, %v816_v5 }
 0xcb6   :  { %v821_v21 = vsel %vm820_vm12, %v1750_v60, %v817_v15 }
 0xcb7   :  { %v826_v18 = vsel %vm823_vm13, %v825_v0, %v821_v21  ;;  %v2196_v21 = vsub.f32 1.0, %v2193_v19 }
 0xcb8   :  { %v829_v39 = vmul.f32 0.0, %v826_v18 }
 0xcfd   :  { %v501_v48 = vpop.permute.xlu2 %500 }
 0xcfe   :  { %v503_v49 = vmul.f32 %v501_v48, %v480_v35 }
 0xd00   :  { %507 = vrot.lane.b32.xlu0 %v503_v49, %s1832_s15 }
 0xd08   :  { %831 = vrot.lane.b32.xlu0 %v1746_v50, %s1830_s11 }
 0xd0e   :  { %v515_v53 = vpop.permute.xlu1 %514 }
 0xd0f   :  { %v517_v55 = vmul.f32 %v515_v53, %v2120_v51 }
 0xd11   :  { %v2128_v56 = vadd.f32 %v518_v54, %v517_v55 }
 0xd13   :  { %567 = vrot.lane.b32.xlu1 %v2128_v56, %s1830_s11 }
 0xd72   :  { %v508_v8 = vpop.permute.xlu0 %507 }
 0xd73   :  { %v510_v10 = vmul.f32 %v508_v8, %v2120_v51 }
 0xd75   :  { %v2135_v17 = vadd.f32 %v511_v9, %v510_v10  ;;  %520 = vst.msk [vmem:[#allocation2 + $0x28] sm:$0xff] %vm28_vm4, %v510_v10 }
 0xd77   :  { %1651 = vmatmul.msk.f32.vlgmr.msrb.gmra.mxu2 %vm28_vm4, %v2135_v17 }
 0xd78   :  { %901 = vmatpush.msrb.mxu2 %v2056_v11 }
 0xd7a   :  { %v832_v4 = vpop.permute.xlu0 %831  ;;  %902 = vmatpush.msrb.mxu2 %v2061_v12 }
 0xd7b   :  { %v834_v1 = vmul.f32 %v832_v4, %v826_v18 }
 0xd7c   :  { %v698_v22 = vld [vmem:[#allocation2 + $0x28] sm:$0xff]  ;;  %903 = vmatpush.msrb.mxu2 %v2068_v13 }
 0xd7d   :  { %1662 = vmatmul.msk.f32.gmra.mxu3 %vm28_vm4, %v698_v22  ;;  %836 = vrot.lane.b32.xlu0 %v834_v1, %s1830_s11 }
 0xd7e   :  { %904 = vmatpush.msrb.mxu2 %v2077_v14 }
 0xd85   :  { %v568_v48 = vpop.permute.xlu1 %567 }
 0xdef   :  { %v837_v37 = vpop.permute.xlu0 %836 }
 0xdf0   :  { %v839_v42 = vadd.f32 %v837_v37, %v829_v39 }
 0xdfa   :  { %v542_v23 = vpop.f32.mrf.mxu2 }
 0xdfb   :  { %v545_v3 = vadd.f32 %v542_v23, %v521_v2 }
 0xdfd   :  { %1751 = vtanh.f32 %v545_v3  ;;  %v1652_v25 = vmul.f32 -1.442695, %v545_v3 }
 0xdff   :  { %1753 = vpow2.f32 %v1652_v25 }
 0xe03   :  { %v1752_v24 = vpop.eup %1751 }
 0xe04   :  { %572 = vrot.lane.b32.xlu2 %v1752_v24, %s1830_s11  ;;  %v753_v24 = vpop.f32.mrf.mxu0 }
 0xe05   :  { %v1754_v26 = vpop.eup %1753  ;;  %v754_v25 = vadd.f32 %v2112_v43, %v753_v24 }
 0xe06   :  { %v549_v27 = vadd.f32 1.0, %v1754_v26 }
 0xe08   :  { %1755 = vrcp.f32 %v549_v27  ;;  %v561_v35 = vand.u32 2147483648, %v549_v27  ;;  %vm555_vm15 = vweird.f32 %v549_v27  ;;  %v559_v36 = vand.u32 2147483647, %v549_v27 }
 0xe09   :  { %1757 = vtanh.f32 %v839_v42 }
 0xe0a   :  { %v562_v40 = vor.u32 1.1754944e-38, %v561_v35  ;;  %vm560_vm1 = vcmp.eq.f32.partialorder %v559_v36, 8.507059e+37 }
 0xe0e   :  { %v1756_v29 = vpop.eup %1755 }
 0xe0f   :  { %v551_v31 = vmul.f32 %v1756_v29, %v549_v27  ;;  %vm556_vm14 = vweird.f32 %v1756_v29  ;;  %v1758_v47 = vpop.eup %1757 }
 0xe10   :  { %vm557_vm0 = vmor %vm555_vm15, %vm556_vm14 }
 0xe11   :  { %v552_v32 = vsub.f32 1.0, %v551_v31 }
 0xe13   :  { %v553_v33 = vmul.f32 %v1756_v29, %v552_v32 }
 0xe15   :  { %v554_v34 = vadd.f32 %v1756_v29, %v553_v33 }
 0xe17   :  { %v558_v38 = vsel %vm557_vm0, %v1756_v29, %v554_v34 }
 0xe18   :  { %v563_v45 = vsel %vm560_vm1, %v562_v40, %v558_v38 }
 0xe19   :  { %v570_v49 = vmul.f32 %v568_v48, %v563_v45 }
 0xe5e   :  { %v573_v44 = vpop.permute.xlu2 %572 }
 0xe5f   :  { %v575_v46 = vmul.f32 %v573_v44, %v563_v45 }
 0xe61   :  { %577 = vrot.lane.b32.xlu2 %v575_v46, %s1830_s11 }
 0xe69   :  { %842 = vrot.lane.b32.xlu2 %v1758_v47, %s1830_s11 }
 0xebb   :  { %v578_v50 = vpop.permute.xlu2 %577 }
 0xebc   :  { %v580_v53 = vadd.f32 %v578_v50, %v570_v49 }
 0xebe   :  { %1759 = vtanh.f32 %v580_v53  ;;  %597 = vrot.lane.b32.xlu2 %v580_v53, %s1831_s12 }
 0xec3   :  { %v843_v55 = vpop.permute.xlu2 %842 }
 0xec4   :  { %v1760_v54 = vpop.eup %1759  ;;  %v845_v57 = vmul.f32 %v843_v55, %v826_v18  ;;  %v594_v18 = vmul.f32 %v2196_v21, %v2135_v17  ;;  %v604_v17 = vld [vmem:[%s2634_s0 + $0x38] sm:$0xff] }
 0xec5   :  { %583 = vrot.lane.b32.xlu1 %v1760_v54, %s1830_s11 }
 0xecd   :  { %849 = vrot.lane.b32.xlu1 %v845_v57, %s1832_s15 }
 0xed5   :  { %856 = vrot.lane.b32.xlu1 %v839_v42, %s1831_s12 }
 0xf18   :  { %v598_v29 = vpop.permute.xlu2 %597 }
 0xf37   :  { %v584_v58 = vpop.permute.xlu1 %583 }
 0xf38   :  { %v586_v59 = vmul.f32 %v584_v58, %v563_v45 }
 0xf3a   :  { %590 = vrot.lane.b32.xlu0 %v586_v59, %s1832_s15 }
 0xf3f   :  { %v850_v60 = vpop.permute.xlu1 %849 }
 0xf40   :  { %v852_v61 = vmul.f32 %v850_v60, %v1928_v28 }
 0xf42   :  { %v862_v62 = vrot.slane %v852_v61, 1  ;;  %v863_v5 = vrot.slane %v852_v61, 2  ;;  %v864_v8 = vrot.slane %v852_v61, 3  ;;  %877 = vst.msk [vmem:[%s2638_s5] sm:$0x1] %vm876_vm2, %v852_v61  ;;  %v865_v9 = vrot.slane %v852_v61, 4 }
 0xf43   :  { %v866_v10 = vrot.slane %v852_v61, 5  ;;  %v867_v15 = vrot.slane %v852_v61, 6  ;;  %v868_v16 = vrot.slane %v852_v61, 7  ;;  %v2210_v2 = vadd.f32 %v852_v61, %v1931_v30 }
 0xf44   :  { %878 = vst.msk [vmem:[%s2638_s5 + $0x8] sm:$0x1] %vm876_vm2, %v862_v62 }
 0xf45   :  { %879 = vst.msk [vmem:[%s2638_s5 + $0x10] sm:$0x1] %vm876_vm2, %v863_v5 }
 0xf46   :  { %880 = vst.msk [vmem:[%s2638_s5 + $0x18] sm:$0x1] %vm876_vm2, %v864_v8 }
 0xf47   :  { %881 = vst.msk [vmem:[%s2638_s5 + $0x20] sm:$0x1] %vm876_vm2, %v865_v9  ;;  %v857_v32 = vpop.permute.xlu1 %856 }
 0xf48   :  { %882 = vst.msk [vmem:[%s2638_s5 + $0x28] sm:$0x1] %vm876_vm2, %v866_v10  ;;  %v859_v33 = vmul.f32 %v857_v32, %v1928_v28 }
 0xf49   :  { %883 = vst.msk [vmem:[%s2638_s5 + $0x30] sm:$0x1] %vm876_vm2, %v867_v15 }
 0xf4a   :  { %884 = vst.msk [vmem:[%s2638_s5 + $0x38] sm:$0x1] %vm876_vm2, %v868_v16  ;;  %v2235_v34 = vadd.f32 %v859_v33, %v1931_v30 }
 0xfac   :  { %v591_v0 = vpop.permute.xlu0 %590 }
 0xfad   :  { %v593_v4 = vmul.f32 %v591_v0, %v2193_v19 }
 0xfaf   :  { %v2201_v1 = vadd.f32 %v594_v18, %v593_v4  ;;  %603 = vst.msk [vmem:[#allocation2 + $0x30] sm:$0xff] %vm28_vm4, %v593_v4 }
 0xfb1   :  { %1653 = vmatmul.msk.f32.vlgmr.msra.gmra.mxu2 %vm28_vm4, %v2201_v1 }
 0xfb2   :  { %1216 = vmatpush.msra.mxu2 %v2056_v11 }
 0xfb4   :  { %1217 = vmatpush.msra.mxu2 %v2061_v12 }
 0xfb6   :  { %v699_v22 = vld [vmem:[#allocation2 + $0x30] sm:$0xff]  ;;  %1218 = vmatpush.msra.mxu2 %v2068_v13 }
 0xfb7   :  { %1663 = vmatmul.msk.f32.gmra.mxu3 %vm28_vm4, %v699_v22 }
 0xfb8   :  { %1219 = vmatpush.msra.mxu2 %v2077_v14 }
 0xfb9   :  { %1670 = vmatmul.msk.f32.vlgmr.msrb.gmra.mxu2 %vm28_vm4, %v2210_v2 }
 0xfba   :  { %1531 = vmatpush.msrb.mxu2 %v2056_v11 }
 0xfbc   :  { %1532 = vmatpush.msrb.mxu2 %v2061_v12  ;;  %v600_v12 = vmul.f32 %v598_v29, %v2193_v19  ;;  %v965_v29 = vmul.f32 %v2235_v34, %v1959_v7 }
 0xfbe   :  { %1533 = vmatpush.msrb.mxu2 %v2068_v13  ;;  %v601_v13 = vmul.f32 %v2196_v21, %v2128_v56 }
 0xfc0   :  { %1534 = vmatpush.msrb.mxu2 %v2077_v14  ;;  %v2228_v14 = vadd.f32 %v601_v13, %v600_v12 }
0x1034   :  { %v625_v23 = vpop.f32.mrf.mxu2 }
0x1035   :  { %v628_v3 = vadd.f32 %v625_v23, %v604_v17 }
0x1037   :  { %1761 = vtanh.f32 %v628_v3  ;;  %v1654_v37 = vmul.f32 -1.442695, %v628_v3 }
0x103c   :  { %v906_v26 = vpop.f32.mrf.mxu2 }
0x103d   :  { %v1762_v27 = vpop.eup %1761  ;;  %v909_v11 = vadd.f32 %v906_v26, %v754_v25 }
0x103e   :  { %655 = vrot.lane.b32.xlu0 %v1762_v27, %s1830_s11 }
0x103f   :  { %1763 = vtanh.f32 %v909_v11  ;;  %v1671_v35 = vmul.f32 -1.442695, %v909_v11 }
0x1041   :  { %1765 = vpow2.f32 %v1671_v35 }
0x1045   :  { %v1764_v31 = vpop.eup %1763 }
0x1046   :  { %936 = vrot.lane.b32.xlu2 %v1764_v31, %s1830_s11  ;;  %650 = vrot.lane.b32.xlu0 %v2228_v14, %s1830_s11 }
0x1047   :  { %v1766_v56 = vpop.eup %1765 }
0x1048   :  { %v913_v36 = vadd.f32 1.0, %v1766_v56 }
0x104a   :  { %1767 = vrcp.f32 %v913_v36  ;;  %v925_v46 = vand.u32 2147483648, %v913_v36  ;;  %vm919_vm5 = vweird.f32 %v913_v36  ;;  %v923_v47 = vand.u32 2147483647, %v913_v36 }
0x104b   :  { %1769 = vpow2.f32 %v1654_v37 }
0x104c   :  { %v926_v50 = vor.u32 1.1754944e-38, %v925_v46  ;;  %vm924_vm7 = vcmp.eq.f32.partialorder %v923_v47, 8.507059e+37  ;;  %v958_v47 = vmul.f32 %v2210_v2, %v1959_v7 }
0x104e   :  { %931 = vrot.lane.b32.xlu2 %v2235_v34, %s1830_s11 }
0x1050   :  { %v1768_v38 = vpop.eup %1767 }
0x1051   :  { %v1770_v39 = vpop.eup %1769  ;;  %v915_v40 = vmul.f32 %v1768_v38, %v913_v36  ;;  %vm920_vm3 = vweird.f32 %v1768_v38 }
0x1052   :  { %v632_v42 = vadd.f32 1.0, %v1770_v39  ;;  %vm921_vm6 = vmor %vm919_vm5, %vm920_vm3  ;;  %v2292_v39 = vld [vmem:[%s2635_s4 + $0x38] sm:$0xff] }
0x1053   :  { %v916_v44 = vsub.f32 1.0, %v915_v40  ;;  %v2295_v40 = vsub.f32 1.0, %v2292_v39 }
0x1054   :  { %1771 = vrcp.f32 %v632_v42  ;;  %v644_v60 = vand.u32 2147483648, %v632_v42  ;;  %vm638_vm9 = vweird.f32 %v632_v42  ;;  %v642_v61 = vand.u32 2147483647, %v632_v42 }
0x1055   :  { %v917_v28 = vmul.f32 %v1768_v38, %v916_v44  ;;  %v677_v44 = vmul.f32 %v2295_v40, %v2201_v1  ;;  %v2309_v1 = vpop.f32.mrf.mxu3 }
0x1056   :  { %v645_v5 = vor.u32 1.1754944e-38, %v644_v60  ;;  %vm643_vm11 = vcmp.eq.f32.partialorder %v642_v61, 8.507059e+37 }
0x1057   :  { %v918_v45 = vadd.f32 %v1768_v38, %v917_v28 }
0x1059   :  { %v922_v48 = vsel %vm921_vm6, %v1768_v38, %v918_v45 }
0x105a   :  { %v1772_v30 = vpop.eup %1771  ;;  %v927_v54 = vsel %vm924_vm7, %v926_v50, %v922_v48 }
0x105b   :  { %v634_v49 = vmul.f32 %v1772_v30, %v632_v42  ;;  %vm639_vm8 = vweird.f32 %v1772_v30 }
0x105c   :  { %vm640_vm10 = vmor %vm638_vm9, %vm639_vm8 }
0x105d   :  { %v635_v57 = vsub.f32 1.0, %v634_v49  ;;  %v2311_v49 = vpop.f32.mrf.mxu3 }
0x105f   :  { %v636_v58 = vmul.f32 %v1772_v30, %v635_v57 }
0x1061   :  { %v637_v59 = vadd.f32 %v1772_v30, %v636_v58 }
0x1063   :  { %v641_v62 = vsel %vm640_vm10, %v1772_v30, %v637_v59 }
0x1064   :  { %v646_v9 = vsel %vm643_vm11, %v645_v5, %v641_v62 }
0x1065   :  { %v2313_v50 = vpop.f32.mrf.mxu3 }
0x10a0   :  { %v937_v53 = vpop.permute.xlu2 %936 }
0x10a1   :  { %v939_v55 = vmul.f32 %v937_v53, %v927_v54 }
0x10a3   :  { %941 = vrot.lane.b32.xlu0 %v939_v55, %s1830_s11 }
0x10a8   :  { %v932_v16 = vpop.permute.xlu2 %931 }
0x10a9   :  { %v934_v0 = vmul.f32 %v932_v16, %v927_v54 }
0x10b0   :  { %v656_v8 = vpop.permute.xlu0 %655 }
0x10b1   :  { %v658_v10 = vmul.f32 %v656_v8, %v646_v9 }
0x10b3   :  { %660 = vrot.lane.b32.xlu1 %v658_v10, %s1830_s11 }
0x10b8   :  { %v651_v15 = vpop.permute.xlu0 %650 }
0x10b9   :  { %v653_v17 = vmul.f32 %v651_v15, %v646_v9 }
0x1115   :  { %v942_v18 = vpop.permute.xlu0 %941 }
0x1116   :  { %v944_v4 = vadd.f32 %v942_v18, %v934_v0 }
0x1118   :  { %1773 = vtanh.f32 %v944_v4 }
0x111e   :  { %v1774_v22 = vpop.eup %1773 }
0x111f   :  { %947 = vrot.lane.b32.xlu2 %v1774_v22, %s1830_s11 }
0x1125   :  { %v661_v23 = vpop.permute.xlu1 %660 }
0x1126   :  { %v2242_v3 = vadd.f32 %v661_v23, %v653_v17 }
0x1127   :  { %961 = vrot.lane.b32.xlu2 %v944_v4, %s1831_s12 }
0x1128   :  { %1775 = vtanh.f32 %v2242_v3 }
0x112e   :  { %v1776_v24 = vpop.eup %1775 }
0x112f   :  { %666 = vrot.lane.b32.xlu1 %v1776_v24, %s1830_s11 }
0x1179   :  { %v948_v25 = vpop.permute.xlu2 %947 }
0x117a   :  { %v950_v26 = vmul.f32 %v948_v25, %v927_v54  ;;  %v756_v54 = vpop.f32.mrf.mxu0 }
0x117b   :  { %v757_v55 = vadd.f32 %v2112_v43, %v756_v54 }
0x117c   :  { %954 = vrot.lane.b32.xlu1 %v950_v26, %s1832_s15 }
0x1181   :  { %v962_v27 = vpop.permute.xlu2 %961 }
0x1182   :  { %v964_v11 = vmul.f32 %v962_v27, %v1956_v6 }
0x1184   :  { %v2251_v12 = vadd.f32 %v965_v29, %v964_v11 }
0x1186   :  { %1036 = vrot.lane.b32.xlu1 %v2251_v12, %s1830_s11 }
0x11a1   :  { %v667_v13 = vpop.permute.xlu1 %666 }
0x11a2   :  { %v669_v31 = vmul.f32 %v667_v13, %v646_v9  ;;  %v1825_v13 = vld [vmem:[%s2635_s4 + $0x10] sm:$0xff] }
0x11a4   :  { %673 = vrot.lane.b32.xlu0 %v669_v31, %s1832_s15 }
0x11ee   :  { %v955_v32 = vpop.permute.xlu1 %954 }
0x11ef   :  { %v957_v33 = vmul.f32 %v955_v32, %v1956_v6  ;;  %v1070_v32 = vmul.f32 %v2251_v12, %v1983_v41 }
0x11f1   :  { %v968_v35 = vrot.slane %v957_v33, 1  ;;  %v969_v56 = vrot.slane %v957_v33, 2  ;;  %v970_v36 = vrot.slane %v957_v33, 3  ;;  %982 = vst.msk [vmem:[%s2638_s5 + $0x1] sm:$0x1] %vm876_vm2, %v957_v33  ;;  %v971_v34 = vrot.slane %v957_v33, 4 }
0x11f2   :  { %v972_v37 = vrot.slane %v957_v33, 5  ;;  %v973_v38 = vrot.slane %v957_v33, 6  ;;  %v974_v6 = vrot.slane %v957_v33, 7  ;;  %v959_v48 = vadd.f32 %v958_v47, %v957_v33 }
0x11f3   :  { %983 = vst.msk [vmem:[%s2638_s5 + $0x9] sm:$0x1] %vm876_vm2, %v968_v35 }
0x11f4   :  { %984 = vst.msk [vmem:[%s2638_s5 + $0x11] sm:$0x1] %vm876_vm2, %v969_v56 }
0x11f5   :  { %985 = vst.msk [vmem:[%s2638_s5 + $0x19] sm:$0x1] %vm876_vm2, %v970_v36  ;;  %v1063_v36 = vmul.f32 %v959_v48, %v1983_v41 }
0x11f6   :  { %986 = vst.msk [vmem:[%s2638_s5 + $0x21] sm:$0x1] %vm876_vm2, %v971_v34 }
0x11f7   :  { %987 = vst.msk [vmem:[%s2638_s5 + $0x29] sm:$0x1] %vm876_vm2, %v972_v37 }
0x11f8   :  { %988 = vst.msk [vmem:[%s2638_s5 + $0x31] sm:$0x1] %vm876_vm2, %v973_v38  ;;  %v1037_v17 = vpop.permute.xlu1 %1036 }
0x11f9   :  { %989 = vst.msk [vmem:[%s2638_s5 + $0x39] sm:$0x1] %vm876_vm2, %v974_v6 }
0x1216   :  { %v674_v42 = vpop.permute.xlu0 %673 }
0x1217   :  { %v676_v28 = vmul.f32 %v674_v42, %v2292_v39 }
0x1219   :  { %v678_v45 = vadd.f32 %v677_v44, %v676_v28  ;;  %686 = vst.msk [vmem:[#allocation2 + $0x38] sm:$0xff] %vm28_vm4, %v676_v28  ;;  %v759_v28 = vpop.f32.mrf.mxu0 }
0x121b   :  { %v1655_v30 = vclamps-f32 %v678_v45, 0.5  ;;  %v760_v45 = vadd.f32 %v2112_v43, %v759_v28 }
0x121d   :  { %689 = vst.msk [vmem:[%s2639_s6] sm:$0xff] %vm28_vm4, %v1655_v30 }
0x1220   :  { %v700_v46 = vld [vmem:[#allocation2 + $0x38] sm:$0xff] }
0x1221   :  { %1664 = vmatmul.msk.f32.gmra.mxu3 %vm28_vm4, %v700_v46 }
0x1229   :  { %1672 = vmatmul.msk.f32.vlgmr.msrb.gmra.mxu3 %vm28_vm4, %v959_v48 }
0x12a4   :  { %v2315_v53 = vpop.f32.mrf.mxu3 }
0x12ac   :  { %v1011_v57 = vpop.f32.mrf.mxu3 }
0x12ad   :  { %v1014_v58 = vadd.f32 %v1011_v57, %v757_v55 }
0x12af   :  { %1777 = vtanh.f32 %v1014_v58  ;;  %v1673_v7 = vmul.f32 -1.442695, %v1014_v58 }
0x12b1   :  { %1779 = vpow2.f32 %v1673_v7 }
0x12b5   :  { %v1778_v59 = vpop.eup %1777 }
0x12b6   :  { %1041 = vrot.lane.b32.xlu0 %v1778_v59, %s1830_s11 }
0x12b7   :  { %v1780_v2 = vpop.eup %1779 }
0x12b8   :  { %v1018_v60 = vadd.f32 1.0, %v1780_v2 }
0x12ba   :  { %1781 = vrcp.f32 %v1018_v60  ;;  %v1030_v10 = vand.u32 2147483648, %v1018_v60  ;;  %vm1024_vm13 = vweird.f32 %v1018_v60  ;;  %v1028_v15 = vand.u32 2147483647, %v1018_v60 }
0x12bc   :  { %v1031_v0 = vor.u32 1.1754944e-38, %v1030_v10  ;;  %vm1029_vm15 = vcmp.eq.f32.partialorder %v1028_v15, 8.507059e+37 }
0x12c0   :  { %v1782_v61 = vpop.eup %1781 }
0x12c1   :  { %v1020_v62 = vmul.f32 %v1782_v61, %v1018_v60  ;;  %vm1025_vm12 = vweird.f32 %v1782_v61 }
0x12c2   :  { %vm1026_vm14 = vmor %vm1024_vm13, %vm1025_vm12 }
0x12c3   :  { %v1021_v5 = vsub.f32 1.0, %v1020_v62 }
0x12c5   :  { %v1022_v8 = vmul.f32 %v1782_v61, %v1021_v5 }
0x12c7   :  { %v1023_v9 = vadd.f32 %v1782_v61, %v1022_v8 }
0x12c9   :  { %v1027_v16 = vsel %vm1026_vm14, %v1782_v61, %v1023_v9 }
0x12ca   :  { %v1032_v4 = vsel %vm1029_vm15, %v1031_v0, %v1027_v16 }
0x12cb   :  { %v1039_v23 = vmul.f32 %v1037_v17, %v1032_v4 }
0x1328   :  { %v1042_v18 = vpop.permute.xlu0 %1041 }
0x1329   :  { %v1044_v22 = vmul.f32 %v1042_v18, %v1032_v4 }
0x132b   :  { %1046 = vrot.lane.b32.xlu2 %v1044_v22, %s1830_s11 }
0x1385   :  { %v1047_v24 = vpop.permute.xlu2 %1046 }
0x1386   :  { %v1049_v25 = vadd.f32 %v1047_v24, %v1039_v23  ;;  %v1826_v24 = vld [vmem:[%s2635_s4 + $0x18] sm:$0xff] }
0x1388   :  { %1783 = vtanh.f32 %v1049_v25  ;;  %1066 = vrot.lane.b32.xlu2 %v1049_v25, %s1831_s12 }
0x138e   :  { %v1784_v26 = vpop.eup %1783 }
0x138f   :  { %1052 = vrot.lane.b32.xlu0 %v1784_v26, %s1830_s11 }
0x13e2   :  { %v1067_v11 = vpop.permute.xlu2 %1066 }
0x13e3   :  { %v1069_v31 = vmul.f32 %v1825_v13, %v1067_v11 }
0x13e5   :  { %v2328_v33 = vadd.f32 %v1070_v32, %v1069_v31 }
0x13e7   :  { %v1175_v26 = vmul.f32 %v2328_v33, %v2004_v20 }
0x1401   :  { %v1053_v27 = vpop.permute.xlu0 %1052 }
0x1402   :  { %v1055_v29 = vmul.f32 %v1053_v27, %v1032_v4 }
0x1404   :  { %1059 = vrot.lane.b32.xlu1 %v1055_v29, %s1832_s15 }
0x140c   :  { %1141 = vrot.lane.b32.xlu1 %v2328_v33, %s1830_s11 }
0x1476   :  { %v1060_v35 = vpop.permute.xlu1 %1059 }
0x1477   :  { %v1062_v56 = vmul.f32 %v1825_v13, %v1060_v35 }
0x1479   :  { %v1073_v34 = vrot.slane %v1062_v56, 1  ;;  %v1074_v37 = vrot.slane %v1062_v56, 2  ;;  %v1075_v38 = vrot.slane %v1062_v56, 3  ;;  %1087 = vst.msk [vmem:[%s2638_s5 + $0x2] sm:$0x1] %vm876_vm2, %v1062_v56  ;;  %v1076_v6 = vrot.slane %v1062_v56, 4 }
0x147a   :  { %v1064_v42 = vadd.f32 %v1063_v36, %v1062_v56  ;;  %v1077_v12 = vrot.slane %v1062_v56, 5  ;;  %v1078_v44 = vrot.slane %v1062_v56, 6  ;;  %v1079_v41 = vrot.slane %v1062_v56, 7 }
0x147b   :  { %1088 = vst.msk [vmem:[%s2638_s5 + $0xa] sm:$0x1] %vm876_vm2, %v1073_v34 }
0x147c   :  { %1089 = vst.msk [vmem:[%s2638_s5 + $0x12] sm:$0x1] %vm876_vm2, %v1074_v37  ;;  %1674 = vmatmul.msk.f32.vlgmr.msra.gmra.mxu1 %vm28_vm4, %v1064_v42  ;;  %v1168_v13 = vmul.f32 %v1064_v42, %v2004_v20  ;;  %v763_v37 = vadd.f32 %v2112_v43, %v2309_v1 }
0x147d   :  { %1090 = vst.msk [vmem:[%s2638_s5 + $0x1a] sm:$0x1] %vm876_vm2, %v1075_v38 }
0x147e   :  { %1091 = vst.msk [vmem:[%s2638_s5 + $0x22] sm:$0x1] %vm876_vm2, %v1076_v6  ;;  %v1142_v15 = vpop.permute.xlu1 %1141 }
0x147f   :  { %1092 = vst.msk [vmem:[%s2638_s5 + $0x2a] sm:$0x1] %vm876_vm2, %v1077_v12 }
0x1480   :  { %1093 = vst.msk [vmem:[%s2638_s5 + $0x32] sm:$0x1] %vm876_vm2, %v1078_v44 }
0x1481   :  { %1094 = vst.msk [vmem:[%s2638_s5 + $0x3a] sm:$0x1] %vm876_vm2, %v1079_v41 }
0x14f9   :  { %v1116_v30 = vpop.f32.mrf.mxu1 }
0x14fa   :  { %v1119_v46 = vadd.f32 %v1116_v30, %v760_v45 }
0x14fc   :  { %1785 = vtanh.f32 %v1119_v46  ;;  %v1675_v48 = vmul.f32 -1.442695, %v1119_v46 }
0x14fe   :  { %1787 = vpow2.f32 %v1675_v48 }
0x1502   :  { %v1786_v47 = vpop.eup %1785 }
0x1503   :  { %1146 = vrot.lane.b32.xlu0 %v1786_v47, %s1830_s11 }
0x1504   :  { %v1788_v54 = vpop.eup %1787 }
0x1505   :  { %v1123_v55 = vadd.f32 1.0, %v1788_v54 }
0x1507   :  { %1789 = vrcp.f32 %v1123_v55  ;;  %v1135_v60 = vand.u32 2147483648, %v1123_v55  ;;  %vm1129_vm1 = vweird.f32 %v1123_v55  ;;  %v1133_v61 = vand.u32 2147483647, %v1123_v55 }
0x1509   :  { %v1136_v5 = vor.u32 1.1754944e-38, %v1135_v60  ;;  %vm1134_vm5 = vcmp.eq.f32.partialorder %v1133_v61, 8.507059e+37 }
0x150d   :  { %v1790_v57 = vpop.eup %1789 }
0x150e   :  { %v1125_v58 = vmul.f32 %v1790_v57, %v1123_v55  ;;  %vm1130_vm0 = vweird.f32 %v1790_v57 }
0x150f   :  { %vm1131_vm3 = vmor %vm1129_vm1, %vm1130_vm0 }
0x1510   :  { %v1126_v59 = vsub.f32 1.0, %v1125_v58 }
0x1512   :  { %v1127_v7 = vmul.f32 %v1790_v57, %v1126_v59 }
0x1514   :  { %v1128_v2 = vadd.f32 %v1790_v57, %v1127_v7 }
0x1516   :  { %v1132_v62 = vsel %vm1131_vm3, %v1790_v57, %v1128_v2 }
0x1517   :  { %v1137_v9 = vsel %vm1134_vm5, %v1136_v5, %v1132_v62 }
0x1518   :  { %v1144_v16 = vmul.f32 %v1142_v15, %v1137_v9 }
0x1575   :  { %v1147_v8 = vpop.permute.xlu0 %1146 }
0x1576   :  { %v1149_v10 = vmul.f32 %v1147_v8, %v1137_v9 }
0x1578   :  { %1151 = vrot.lane.b32.xlu2 %v1149_v10, %s1830_s11  ;;  %v1827_v10 = vld [vmem:[%s2635_s4 + $0x20] sm:$0xff] }
0x15d2   :  { %v1152_v0 = vpop.permute.xlu2 %1151 }
0x15d3   :  { %v1154_v18 = vadd.f32 %v1152_v0, %v1144_v16 }
0x15d5   :  { %1791 = vtanh.f32 %v1154_v18  ;;  %1171 = vrot.lane.b32.xlu2 %v1154_v18, %s1831_s12 }
0x15db   :  { %v1792_v4 = vpop.eup %1791 }
0x15dc   :  { %1157 = vrot.lane.b32.xlu0 %v1792_v4, %s1830_s11 }
0x162f   :  { %v1172_v23 = vpop.permute.xlu2 %1171 }
0x1630   :  { %v1174_v25 = vmul.f32 %v1826_v24, %v1172_v23 }
0x1632   :  { %v2377_v27 = vadd.f32 %v1175_v26, %v1174_v25 }
0x1634   :  { %v1280_v16 = vmul.f32 %v2377_v27, %v2045_v63 }
0x164e   :  { %v1158_v22 = vpop.permute.xlu0 %1157 }
0x164f   :  { %v1160_v17 = vmul.f32 %v1158_v22, %v1137_v9 }
0x1651   :  { %1164 = vrot.lane.b32.xlu1 %v1160_v17, %s1832_s15 }
0x1659   :  { %1246 = vrot.lane.b32.xlu1 %v2377_v27, %s1830_s11 }
0x16c3   :  { %v1165_v29 = vpop.permute.xlu1 %1164 }
0x16c4   :  { %v1167_v11 = vmul.f32 %v1826_v24, %v1165_v29 }
0x16c6   :  { %v1178_v31 = vrot.slane %v1167_v11, 1  ;;  %v1179_v32 = vrot.slane %v1167_v11, 2  ;;  %v1180_v35 = vrot.slane %v1167_v11, 3  ;;  %1192 = vst.msk [vmem:[%s2638_s5 + $0x3] sm:$0x1] %vm876_vm2, %v1167_v11  ;;  %v1181_v56 = vrot.slane %v1167_v11, 4 }
0x16c7   :  { %v1169_v36 = vadd.f32 %v1168_v13, %v1167_v11  ;;  %v1182_v33 = vrot.slane %v1167_v11, 5  ;;  %v1183_v34 = vrot.slane %v1167_v11, 6  ;;  %v1184_v20 = vrot.slane %v1167_v11, 7 }
0x16c8   :  { %1193 = vst.msk [vmem:[%s2638_s5 + $0xb] sm:$0x1] %vm876_vm2, %v1178_v31  ;;  %v766_v11 = vadd.f32 %v2112_v43, %v2311_v49 }
0x16c9   :  { %1194 = vst.msk [vmem:[%s2638_s5 + $0x13] sm:$0x1] %vm876_vm2, %v1179_v32  ;;  %1676 = vmatmul.msk.f32.vlgmr.msra.gmra.mxu2 %vm28_vm4, %v1169_v36  ;;  %v1273_v22 = vmul.f32 %v1169_v36, %v2045_v63 }
0x16ca   :  { %1195 = vst.msk [vmem:[%s2638_s5 + $0x1b] sm:$0x1] %vm876_vm2, %v1180_v35 }
0x16cb   :  { %1196 = vst.msk [vmem:[%s2638_s5 + $0x23] sm:$0x1] %vm876_vm2, %v1181_v56  ;;  %v1247_v7 = vpop.permute.xlu1 %1246 }
0x16cc   :  { %1197 = vst.msk [vmem:[%s2638_s5 + $0x2b] sm:$0x1] %vm876_vm2, %v1182_v33 }
0x16cd   :  { %1198 = vst.msk [vmem:[%s2638_s5 + $0x33] sm:$0x1] %vm876_vm2, %v1183_v34 }
0x16ce   :  { %1199 = vst.msk [vmem:[%s2638_s5 + $0x3b] sm:$0x1] %vm876_vm2, %v1184_v20 }
0x174c   :  { %v1221_v38 = vpop.f32.mrf.mxu2 }
0x174d   :  { %v1224_v6 = vadd.f32 %v1221_v38, %v763_v37 }
0x174f   :  { %1793 = vtanh.f32 %v1224_v6  ;;  %v1677_v12 = vmul.f32 -1.442695, %v1224_v6 }
0x1751   :  { %1795 = vpow2.f32 %v1677_v12 }
0x1755   :  { %v1794_v42 = vpop.eup %1793 }
0x1756   :  { %1251 = vrot.lane.b32.xlu0 %v1794_v42, %s1830_s11 }
0x1757   :  { %v1796_v44 = vpop.eup %1795 }
0x1758   :  { %v1228_v41 = vadd.f32 1.0, %v1796_v44 }
0x175a   :  { %1797 = vrcp.f32 %v1228_v41  ;;  %v1240_v48 = vand.u32 2147483648, %v1228_v41  ;;  %vm1234_vm7 = vweird.f32 %v1228_v41  ;;  %v1238_v1 = vand.u32 2147483647, %v1228_v41 }
0x175c   :  { %v1241_v55 = vor.u32 1.1754944e-38, %v1240_v48  ;;  %vm1239_vm9 = vcmp.eq.f32.partialorder %v1238_v1, 8.507059e+37 }
0x1760   :  { %v1798_v28 = vpop.eup %1797 }
0x1761   :  { %v1230_v45 = vmul.f32 %v1798_v28, %v1228_v41  ;;  %vm1235_vm6 = vweird.f32 %v1798_v28 }
0x1762   :  { %vm1236_vm8 = vmor %vm1234_vm7, %vm1235_vm6 }
0x1763   :  { %v1231_v30 = vsub.f32 1.0, %v1230_v45 }
0x1765   :  { %v1232_v46 = vmul.f32 %v1798_v28, %v1231_v30 }
0x1767   :  { %v1233_v47 = vadd.f32 %v1798_v28, %v1232_v46 }
0x1769   :  { %v1237_v54 = vsel %vm1236_vm8, %v1798_v28, %v1233_v47 }
0x176a   :  { %v1242_v58 = vsel %vm1239_vm9, %v1241_v55, %v1237_v54 }
0x176b   :  { %v1249_v2 = vmul.f32 %v1247_v7, %v1242_v58 }
0x17c8   :  { %v1252_v57 = vpop.permute.xlu0 %1251 }
0x17c9   :  { %v1254_v59 = vmul.f32 %v1252_v57, %v1242_v58 }
0x17cb   :  { %1256 = vrot.lane.b32.xlu2 %v1254_v59, %s1830_s11 }
0x1825   :  { %v1257_v60 = vpop.permute.xlu2 %1256 }
0x1826   :  { %v1259_v61 = vadd.f32 %v1257_v60, %v1249_v2 }
0x1828   :  { %1799 = vtanh.f32 %v1259_v61  ;;  %1276 = vrot.lane.b32.xlu2 %v1259_v61, %s1831_s12 }
0x182e   :  { %v1800_v62 = vpop.eup %1799 }
0x182f   :  { %1262 = vrot.lane.b32.xlu0 %v1800_v62, %s1830_s11 }
0x1882   :  { %v1277_v9 = vpop.permute.xlu2 %1276 }
0x1883   :  { %v1279_v15 = vmul.f32 %v1827_v10, %v1277_v9 }
0x1885   :  { %v2427_v0 = vadd.f32 %v1280_v16, %v1279_v15 }
0x1887   :  { %v1385_v57 = vmul.f32 %v2427_v0, %v2123_v52 }
0x18a1   :  { %v1263_v5 = vpop.permute.xlu0 %1262 }
0x18a2   :  { %v1265_v8 = vmul.f32 %v1263_v5, %v1242_v58 }
0x18a4   :  { %1269 = vrot.lane.b32.xlu1 %v1265_v8, %s1832_s15 }
0x18ac   :  { %1351 = vrot.lane.b32.xlu1 %v2427_v0, %s1830_s11 }
0x1916   :  { %v1270_v18 = vpop.permute.xlu1 %1269 }
0x1917   :  { %v1272_v4 = vmul.f32 %v1827_v10, %v1270_v18 }
0x1919   :  { %v1283_v17 = vrot.slane %v1272_v4, 1  ;;  %v1284_v23 = vrot.slane %v1272_v4, 2  ;;  %v1285_v24 = vrot.slane %v1272_v4, 3  ;;  %1297 = vst.msk [vmem:[%s2638_s5 + $0x4] sm:$0x1] %vm876_vm2, %v1272_v4  ;;  %v1286_v25 = vrot.slane %v1272_v4, 4 }
0x191a   :  { %v1274_v26 = vadd.f32 %v1273_v22, %v1272_v4  ;;  %v1287_v27 = vrot.slane %v1272_v4, 5  ;;  %v1288_v29 = vrot.slane %v1272_v4, 6  ;;  %v1289_v63 = vrot.slane %v1272_v4, 7 }
0x191b   :  { %1298 = vst.msk [vmem:[%s2638_s5 + $0xc] sm:$0x1] %vm876_vm2, %v1283_v17 }
0x191c   :  { %1299 = vst.msk [vmem:[%s2638_s5 + $0x14] sm:$0x1] %vm876_vm2, %v1284_v23  ;;  %1678 = vmatmul.msk.f32.vlgmr.msra.gmra.mxu3 %vm28_vm4, %v1274_v26  ;;  %v1378_v2 = vmul.f32 %v1274_v26, %v2123_v52  ;;  %v2517_v52 = vld [vmem:[%s2637_s3] ss:$0 sm:$0xff] }
0x191d   :  { %1300 = vst.msk [vmem:[%s2638_s5 + $0x1c] sm:$0x1] %vm876_vm2, %v1285_v24  ;;  %v769_v15 = vadd.f32 %v2517_v52, %v2313_v50 }
0x191e   :  { %1301 = vst.msk [vmem:[%s2638_s5 + $0x24] sm:$0x1] %vm876_vm2, %v1286_v25  ;;  %v1352_v28 = vpop.permute.xlu1 %1351 }
0x191f   :  { %1302 = vst.msk [vmem:[%s2638_s5 + $0x2c] sm:$0x1] %vm876_vm2, %v1287_v27 }
0x1920   :  { %1303 = vst.msk [vmem:[%s2638_s5 + $0x34] sm:$0x1] %vm876_vm2, %v1288_v29 }
0x1921   :  { %1304 = vst.msk [vmem:[%s2638_s5 + $0x3c] sm:$0x1] %vm876_vm2, %v1289_v63 }
0x199f   :  { %v1326_v13 = vpop.f32.mrf.mxu3 }
0x19a0   :  { %v1329_v31 = vadd.f32 %v1326_v13, %v766_v11 }
0x19a2   :  { %1801 = vtanh.f32 %v1329_v31  ;;  %v1679_v35 = vmul.f32 -1.442695, %v1329_v31 }
0x19a4   :  { %1803 = vpow2.f32 %v1679_v35 }
0x19a8   :  { %v1802_v32 = vpop.eup %1801 }
0x19a9   :  { %1356 = vrot.lane.b32.xlu0 %v1802_v32, %s1830_s11 }
0x19aa   :  { %v1804_v56 = vpop.eup %1803 }
0x19ab   :  { %v1333_v36 = vadd.f32 1.0, %v1804_v56 }
0x19ad   :  { %1805 = vrcp.f32 %v1333_v36  ;;  %v1345_v6 = vand.u32 2147483648, %v1333_v36  ;;  %vm1339_vm11 = vweird.f32 %v1333_v36  ;;  %v1343_v43 = vand.u32 2147483647, %v1333_v36 }
0x19af   :  { %v1346_v42 = vor.u32 1.1754944e-38, %v1345_v6  ;;  %vm1344_vm13 = vcmp.eq.f32.partialorder %v1343_v43, 8.507059e+37 }
0x19b3   :  { %v1806_v33 = vpop.eup %1805 }
0x19b4   :  { %v1335_v34 = vmul.f32 %v1806_v33, %v1333_v36  ;;  %vm1340_vm10 = vweird.f32 %v1806_v33 }
0x19b5   :  { %vm1341_vm12 = vmor %vm1339_vm11, %vm1340_vm10 }
0x19b6   :  { %v1336_v20 = vsub.f32 1.0, %v1335_v34 }
0x19b8   :  { %v1337_v37 = vmul.f32 %v1806_v33, %v1336_v20 }
0x19ba   :  { %v1338_v38 = vadd.f32 %v1806_v33, %v1337_v37 }
0x19bc   :  { %v1342_v49 = vsel %vm1341_vm12, %v1806_v33, %v1338_v38 }
0x19bd   :  { %v1347_v44 = vsel %vm1344_vm13, %v1346_v42, %v1342_v49 }
0x19be   :  { %v1354_v45 = vmul.f32 %v1352_v28, %v1347_v44 }
0x1a1b   :  { %v1357_v12 = vpop.permute.xlu0 %1356 }
0x1a1c   :  { %v1359_v41 = vmul.f32 %v1357_v12, %v1347_v44 }
0x1a1e   :  { %1361 = vrot.lane.b32.xlu2 %v1359_v41, %s1830_s11 }
0x1a78   :  { %v1362_v30 = vpop.permute.xlu2 %1361 }
0x1a79   :  { %v1364_v46 = vadd.f32 %v1362_v30, %v1354_v45 }
0x1a7b   :  { %1807 = vtanh.f32 %v1364_v46  ;;  %1381 = vrot.lane.b32.xlu2 %v1364_v46, %s1831_s12 }
0x1a81   :  { %v1808_v47 = vpop.eup %1807 }
0x1a82   :  { %1367 = vrot.lane.b32.xlu0 %v1808_v47, %s1830_s11 }
0x1ad5   :  { %v1382_v54 = vpop.permute.xlu2 %1381 }
0x1ad6   :  { %v1384_v55 = vmul.f32 %v1382_v54, %v2120_v51 }
0x1ad8   :  { %v2475_v58 = vadd.f32 %v1385_v57, %v1384_v55 }
0x1ada   :  { %v1490_v43 = vmul.f32 %v2475_v58, %v2196_v21 }
0x1af4   :  { %v1368_v48 = vpop.permute.xlu0 %1367 }
0x1af5   :  { %v1370_v1 = vmul.f32 %v1368_v48, %v1347_v44 }
0x1af7   :  { %1374 = vrot.lane.b32.xlu1 %v1370_v1, %s1832_s15  ;;  %v684_v1 = vmul.f32 %v2295_v40, %v2228_v14 }
0x1aff   :  { %1456 = vrot.lane.b32.xlu1 %v2475_v58, %s1830_s11  ;;  %v772_v58 = vadd.f32 %v2517_v52, %v2315_v53 }
0x1b69   :  { %v1375_v59 = vpop.permute.xlu1 %1374 }
0x1b6a   :  { %v1377_v7 = vmul.f32 %v1375_v59, %v2120_v51 }
0x1b6c   :  { %v1388_v60 = vrot.slane %v1377_v7, 1  ;;  %v1389_v61 = vrot.slane %v1377_v7, 2  ;;  %v1390_v62 = vrot.slane %v1377_v7, 3  ;;  %1402 = vst.msk [vmem:[%s2638_s5 + $0x5] sm:$0x1] %vm876_vm2, %v1377_v7  ;;  %v1391_v5 = vrot.slane %v1377_v7, 4 }
0x1b6d   :  { %v1379_v8 = vadd.f32 %v1378_v2, %v1377_v7  ;;  %v1392_v9 = vrot.slane %v1377_v7, 5  ;;  %v1393_v10 = vrot.slane %v1377_v7, 6  ;;  %v1394_v51 = vrot.slane %v1377_v7, 7 }
0x1b6e   :  { %1403 = vst.msk [vmem:[%s2638_s5 + $0xd] sm:$0x1] %vm876_vm2, %v1388_v60 }
0x1b6f   :  { %1404 = vst.msk [vmem:[%s2638_s5 + $0x15] sm:$0x1] %vm876_vm2, %v1389_v61  ;;  %1680 = vmatmul.msk.f32.vlgmr.msrb.gmra.mxu1 %vm28_vm4, %v1379_v8  ;;  %v1483_v44 = vmul.f32 %v1379_v8, %v2196_v21 }
0x1b70   :  { %1405 = vst.msk [vmem:[%s2638_s5 + $0x1d] sm:$0x1] %vm876_vm2, %v1390_v62 }
0x1b71   :  { %1406 = vst.msk [vmem:[%s2638_s5 + $0x25] sm:$0x1] %vm876_vm2, %v1391_v5  ;;  %v1457_v35 = vpop.permute.xlu1 %1456 }
0x1b72   :  { %1407 = vst.msk [vmem:[%s2638_s5 + $0x2d] sm:$0x1] %vm876_vm2, %v1392_v9 }
0x1b73   :  { %1408 = vst.msk [vmem:[%s2638_s5 + $0x35] sm:$0x1] %vm876_vm2, %v1393_v10 }
0x1b74   :  { %1409 = vst.msk [vmem:[%s2638_s5 + $0x3d] sm:$0x1] %vm876_vm2, %v1394_v51 }
0x1bec   :  { %v1431_v16 = vpop.f32.mrf.mxu1 }
0x1bed   :  { %v1434_v0 = vadd.f32 %v1431_v16, %v769_v15 }
0x1bef   :  { %1809 = vtanh.f32 %v1434_v0  ;;  %v1681_v4 = vmul.f32 -1.442695, %v1434_v0 }
0x1bf1   :  { %1811 = vpow2.f32 %v1681_v4 }
0x1bf5   :  { %v1810_v18 = vpop.eup %1809 }
0x1bf6   :  { %1461 = vrot.lane.b32.xlu0 %v1810_v18, %s1830_s11 }
0x1bf7   :  { %v1812_v22 = vpop.eup %1811 }
0x1bf8   :  { %v1438_v17 = vadd.f32 1.0, %v1812_v22 }
0x1bfa   :  { %1813 = vrcp.f32 %v1438_v17  ;;  %v1450_v29 = vand.u32 2147483648, %v1438_v17  ;;  %vm1444_vm15 = vweird.f32 %v1438_v17  ;;  %v1448_v50 = vand.u32 2147483647, %v1438_v17 }
0x1bfc   :  { %v1451_v11 = vor.u32 1.1754944e-38, %v1450_v29  ;;  %vm1449_vm1 = vcmp.eq.f32.partialorder %v1448_v50, 8.507059e+37 }
0x1c00   :  { %v1814_v23 = vpop.eup %1813 }
0x1c01   :  { %v1440_v24 = vmul.f32 %v1814_v23, %v1438_v17  ;;  %vm1445_vm14 = vweird.f32 %v1814_v23 }
0x1c02   :  { %vm1446_vm0 = vmor %vm1444_vm15, %vm1445_vm14 }
0x1c03   :  { %v1441_v25 = vsub.f32 1.0, %v1440_v24 }
0x1c05   :  { %v1442_v26 = vmul.f32 %v1814_v23, %v1441_v25 }
0x1c07   :  { %v1443_v27 = vadd.f32 %v1814_v23, %v1442_v26 }
0x1c09   :  { %v1447_v63 = vsel %vm1446_vm0, %v1814_v23, %v1443_v27 }
0x1c0a   :  { %v1452_v31 = vsel %vm1449_vm1, %v1451_v11, %v1447_v63 }
0x1c0b   :  { %v1459_v56 = vmul.f32 %v1457_v35, %v1452_v31 }
0x1c68   :  { %v1462_v13 = vpop.permute.xlu0 %1461 }
0x1c69   :  { %v1464_v32 = vmul.f32 %v1462_v13, %v1452_v31 }
0x1c6b   :  { %1466 = vrot.lane.b32.xlu2 %v1464_v32, %s1830_s11 }
0x1cc5   :  { %v1467_v36 = vpop.permute.xlu2 %1466 }
0x1cc6   :  { %v1469_v33 = vadd.f32 %v1467_v36, %v1459_v56 }
0x1cc8   :  { %1815 = vtanh.f32 %v1469_v33  ;;  %1486 = vrot.lane.b32.xlu2 %v1469_v33, %s1831_s12 }
0x1cce   :  { %v1816_v34 = vpop.eup %1815 }
0x1ccf   :  { %1472 = vrot.lane.b32.xlu0 %v1816_v34, %s1830_s11 }
0x1d22   :  { %v1487_v38 = vpop.permute.xlu2 %1486 }
0x1d23   :  { %v1489_v6 = vmul.f32 %v1487_v38, %v2193_v19 }
0x1d25   :  { %v2529_v49 = vadd.f32 %v1490_v43, %v1489_v6 }
0x1d27   :  { %v1595_v27 = vmul.f32 %v2529_v49, %v2295_v40 }
0x1d41   :  { %v1473_v20 = vpop.permute.xlu0 %1472 }
0x1d42   :  { %v1475_v37 = vmul.f32 %v1473_v20, %v1452_v31 }
0x1d44   :  { %1479 = vrot.lane.b32.xlu1 %v1475_v37, %s1832_s15 }
0x1d4c   :  { %1561 = vrot.lane.b32.xlu1 %v2529_v49, %s1830_s11 }
0x1d54   :  { %680 = vrot.lane.b32.xlu1 %v2242_v3, %s1831_s12 }
0x1db6   :  { %v1480_v42 = vpop.permute.xlu1 %1479 }
0x1db7   :  { %v1482_v12 = vmul.f32 %v1480_v42, %v2193_v19 }
0x1db9   :  { %v1493_v41 = vrot.slane %v1482_v12, 1  ;;  %v1494_v28 = vrot.slane %v1482_v12, 2  ;;  %v1495_v45 = vrot.slane %v1482_v12, 3  ;;  %1507 = vst.msk [vmem:[%s2638_s5 + $0x6] sm:$0x1] %vm876_vm2, %v1482_v12  ;;  %v1496_v30 = vrot.slane %v1482_v12, 4 }
0x1dba   :  { %v2541_v46 = vadd.f32 %v1483_v44, %v1482_v12  ;;  %v1497_v47 = vrot.slane %v1482_v12, 5  ;;  %v1498_v19 = vrot.slane %v1482_v12, 6  ;;  %v1499_v21 = vrot.slane %v1482_v12, 7 }
0x1dbb   :  { %1508 = vst.msk [vmem:[%s2638_s5 + $0xe] sm:$0x1] %vm876_vm2, %v1493_v41 }
0x1dbc   :  { %1509 = vst.msk [vmem:[%s2638_s5 + $0x16] sm:$0x1] %vm876_vm2, %v1494_v28  ;;  %1682 = vmatmul.msk.f32.vlgmr.msrb.gmra.mxu2 %vm28_vm4, %v2541_v46  ;;  %v1588_v31 = vmul.f32 %v2541_v46, %v2295_v40 }
0x1dbd   :  { %1510 = vst.msk [vmem:[%s2638_s5 + $0x1e] sm:$0x1] %vm876_vm2, %v1495_v45 }
0x1dbe   :  { %1511 = vst.msk [vmem:[%s2638_s5 + $0x26] sm:$0x1] %vm876_vm2, %v1496_v30  ;;  %v1562_v3 = vpop.permute.xlu1 %1561 }
0x1dbf   :  { %1512 = vst.msk [vmem:[%s2638_s5 + $0x2e] sm:$0x1] %vm876_vm2, %v1497_v47 }
0x1dc0   :  { %1513 = vst.msk [vmem:[%s2638_s5 + $0x36] sm:$0x1] %vm876_vm2, %v1498_v19 }
0x1dc1   :  { %1514 = vst.msk [vmem:[%s2638_s5 + $0x3e] sm:$0x1] %vm876_vm2, %v1499_v21 }
0x1dc6   :  { %v681_v48 = vpop.permute.xlu1 %680 }
0x1dc7   :  { %v683_v54 = vmul.f32 %v681_v48, %v2292_v39 }
0x1dc9   :  { %v685_v55 = vadd.f32 %v684_v1, %v683_v54 }
0x1dcb   :  { %v1656_v57 = vclamps-f32 %v685_v55, 0.5 }
0x1dcd   :  { %692 = vst.msk [vmem:[%s2640_s7] sm:$0xff] %vm28_vm4, %v1656_v57 }
0x1e3f   :  { %v1536_v59 = vpop.f32.mrf.mxu2 }
0x1e40   :  { %v1539_v7 = vadd.f32 %v1536_v59, %v772_v58 }
0x1e42   :  { %1817 = vtanh.f32 %v1539_v7  ;;  %v1683_v60 = vmul.f32 -1.442695, %v1539_v7 }
0x1e44   :  { %1819 = vpow2.f32 %v1683_v60 }
0x1e48   :  { %v1818_v2 = vpop.eup %1817 }
0x1e49   :  { %1566 = vrot.lane.b32.xlu0 %v1818_v2, %s1830_s11 }
0x1e4a   :  { %v1820_v14 = vpop.eup %1819 }
0x1e4b   :  { %v1543_v61 = vadd.f32 1.0, %v1820_v14 }
0x1e4d   :  { %1821 = vrcp.f32 %v1543_v61  ;;  %v1555_v51 = vand.u32 2147483648, %v1543_v61  ;;  %vm1549_vm5 = vweird.f32 %v1543_v61  ;;  %v1553_v53 = vand.u32 2147483647, %v1543_v61 }
0x1e4f   :  { %v1556_v15 = vor.u32 1.1754944e-38, %v1555_v51  ;;  %vm1554_vm7 = vcmp.eq.f32.partialorder %v1553_v53, 8.507059e+37 }
0x1e53   :  { %v1822_v62 = vpop.eup %1821 }
0x1e54   :  { %v1545_v5 = vmul.f32 %v1822_v62, %v1543_v61  ;;  %vm1550_vm3 = vweird.f32 %v1822_v62 }
0x1e55   :  { %vm1551_vm6 = vmor %vm1549_vm5, %vm1550_vm3 }
0x1e56   :  { %v1546_v8 = vsub.f32 1.0, %v1545_v5 }
0x1e58   :  { %v1547_v9 = vmul.f32 %v1822_v62, %v1546_v8 }
0x1e5a   :  { %v1548_v10 = vadd.f32 %v1822_v62, %v1547_v9 }
0x1e5c   :  { %v1552_v52 = vsel %vm1551_vm6, %v1822_v62, %v1548_v10 }
0x1e5d   :  { %v1557_v0 = vsel %vm1554_vm7, %v1556_v15, %v1552_v52 }
0x1e5e   :  { %v1564_v4 = vmul.f32 %v1562_v3, %v1557_v0 }
0x1ebb   :  { %v1567_v16 = vpop.permute.xlu0 %1566 }
0x1ebc   :  { %v1569_v18 = vmul.f32 %v1567_v16, %v1557_v0 }
0x1ebe   :  { %1571 = vrot.lane.b32.xlu2 %v1569_v18, %s1830_s11 }
0x1f18   :  { %v1572_v22 = vpop.permute.xlu2 %1571 }
0x1f19   :  { %v1574_v17 = vadd.f32 %v1572_v22, %v1564_v4 }
0x1f1b   :  { %1823 = vtanh.f32 %v1574_v17 }
0x1f21   :  { %v1824_v23 = vpop.eup %1823 }
0x1f22   :  { %1577 = vrot.lane.b32.xlu0 %v1824_v23, %s1830_s11 }
0x1f2a   :  { %1591 = vrot.lane.b32.xlu0 %v1574_v17, %s1831_s12 }
0x1f94   :  { %v1578_v24 = vpop.permute.xlu0 %1577 }
0x1f95   :  { %v1580_v25 = vmul.f32 %v1578_v24, %v1557_v0 }
0x1f97   :  { %1584 = vrot.lane.b32.xlu2 %v1580_v25, %s1832_s15 }
0x1f9c   :  { %v1592_v26 = vpop.permute.xlu0 %1591 }
0x1f9d   :  { %v1594_v29 = vmul.f32 %v1592_v26, %v2292_v39 }
0x1f9f   :  { %v1596_v50 = vadd.f32 %v1595_v27, %v1594_v29 }
0x1fa1   :  { %v1686_v63 = vclamps-f32 %v1596_v50, 0.5 }
0x1fa3   :  { %1687 = vst.msk [vmem:[%s2640_s7 + $0x8] sm:$0xff] %vm28_vm4, %v1686_v63 }
0x1ff1   :  { %v1585_v11 = vpop.permute.xlu2 %1584 }
0x1ff2   :  { %v1587_v13 = vmul.f32 %v1585_v11, %v2292_v39 }
0x1ff4   :  { %v1598_v32 = vrot.slane %v1587_v13, 1  ;;  %v1599_v35 = vrot.slane %v1587_v13, 2  ;;  %v1600_v56 = vrot.slane %v1587_v13, 3  ;;  %1612 = vst.msk [vmem:[%s2638_s5 + $0x7] sm:$0x1] %vm876_vm2, %v1587_v13  ;;  %v1589_v36 = vadd.f32 %v1588_v31, %v1587_v13 }
0x1ff5   :  { %v1601_v33 = vrot.slane %v1587_v13, 4  ;;  %v1602_v34 = vrot.slane %v1587_v13, 5  ;;  %v1603_v39 = vrot.slane %v1587_v13, 6  ;;  %v1604_v40 = vrot.slane %v1587_v13, 7 }
0x1ff6   :  { %1613 = vst.msk [vmem:[%s2638_s5 + $0xf] sm:$0x1] %vm876_vm2, %v1598_v32  ;;  %v1684_v20 = vclamps-f32 %v1589_v36, 0.5 }
0x1ff7   :  { %1614 = vst.msk [vmem:[%s2638_s5 + $0x17] sm:$0x1] %vm876_vm2, %v1599_v35 }
0x1ff8   :  { %1615 = vst.msk [vmem:[%s2638_s5 + $0x1f] sm:$0x1] %vm876_vm2, %v1600_v56 }
0x1ff9   :  { %1616 = vst.msk [vmem:[%s2638_s5 + $0x27] sm:$0x1] %vm876_vm2, %v1601_v33 }
0x1ffa   :  { %1617 = vst.msk [vmem:[%s2638_s5 + $0x2f] sm:$0x1] %vm876_vm2, %v1602_v34 }
0x1ffb   :  { %1618 = vst.msk [vmem:[%s2638_s5 + $0x37] sm:$0x1] %vm876_vm2, %v1603_v39 }
0x1ffc   :  { %1619 = vst.msk [vmem:[%s2638_s5 + $0x3f] sm:$0x1] %vm876_vm2, %v1604_v40 }
0x1ffd   :  { %1685 = vst.msk [vmem:[%s2639_s6 + $0x8] sm:$0xff] %vm28_vm4, %v1684_v20 }

</bundles_post_ra>
